<compile_context>
chip_gen: v7x
topology: tpu7x:2x2x1
jax: 0.10.0
libtpu: 0.0.40
codegen_flags: <defaults>
</compile_context>

<pallas_src>
import functools

import numpy as np
import jax
import jax.numpy as jnp
from jax import lax
from jax.experimental import pallas as pl
from jax.experimental.pallas import tpu as pltpu

F32 = jnp.float32
BF16 = jnp.bfloat16
KP_FEAT = 128            # kp_feat_dim
ATT_DIM = 2 * KP_FEAT    # descriptor dim after concat with gcn cluster encoding
CLUSTERS = 10            # OTMatcherCls.cluster
GCN_K = 4                # Coarse_gcn_encoding(k=4)
ATT_LAYERS = ("self", "cross", "self")
SINKHORN_ITERS = 30
SINKHORN_LAMBDA = 0.1
KMEANS_ITERS = 8
BIN_SCORE = 1.0          # nn.Parameter(torch.tensor(1.0))
NEG = -1e30              # "minus infinity" that stays finite under subtraction


def _round_up(x, m):
    return ((x + m - 1) // m) * m


def _full_spec(shape):
    # single-block BlockSpec (block == full array) for a grid=(1,) pallas_call
    return pl.BlockSpec(shape, lambda i: (0,) * len(shape))


# ----------------------------------------------------------------------------
# generic linear layer kernel (Conv1d k=1 equivalent), row-tiled
# ----------------------------------------------------------------------------
def _linear_kernel(x_ref, w_ref, b_ref, o_ref, *, act):
    y = jnp.dot(x_ref[...].astype(BF16), w_ref[...],
                preferred_element_type=F32) + b_ref[...]
    if act == "relu":
        y = jnp.maximum(y, 0.0)
    o_ref[...] = y


def pl_linear(x, w, b, act="none"):
    n, cin = x.shape
    cout = w.shape[1]
    tile = 128
    npad = _round_up(n, tile)
    xp = jnp.zeros((npad, cin), F32).at[:n].set(x)
    y = pl.pallas_call(
        functools.partial(_linear_kernel, act=act),
        out_shape=jax.ShapeDtypeStruct((npad, cout), F32),
        grid=(npad // tile,),
        in_specs=[pl.BlockSpec((tile, cin), lambda i: (i, 0)),
                  pl.BlockSpec((cin, cout), lambda i: (0, 0)),
                  pl.BlockSpec((1, cout), lambda i: (0, 0))],
        out_specs=pl.BlockSpec((tile, cout), lambda i: (i, 0)),
        compiler_params=pltpu.CompilerParams(dimension_semantics=("parallel",)),
    )(xp, w.astype(BF16), b)
    return y[:n]


# ----------------------------------------------------------------------------
# PointResNetEncoder: per-point residual MLP, 128-row tiles, bf16 MXU operands
# ----------------------------------------------------------------------------
def _point_resnet_kernel(x_ref, w1, b1, w2a, b2a, w2b, b2b, w3a, b3a, w3b, b3b,
                         wo, bo, o_ref):
    x = x_ref[...].astype(BF16)
    h = jnp.maximum(jnp.dot(x, w1[...], preferred_element_type=F32) + b1[...], 0.0)
    r = jnp.maximum(jnp.dot(h.astype(BF16), w2a[...], preferred_element_type=F32)
                    + b2a[...], 0.0)
    r = jnp.dot(r.astype(BF16), w2b[...], preferred_element_type=F32) + b2b[...]
    h = jnp.maximum(h + r, 0.0)
    r = jnp.maximum(jnp.dot(h.astype(BF16), w3a[...], preferred_element_type=F32)
                    + b3a[...], 0.0)
    r = jnp.dot(r.astype(BF16), w3b[...], preferred_element_type=F32) + b3b[...]
    h = jnp.maximum(h + r, 0.0)
    o_ref[...] = jnp.dot(h.astype(BF16), wo[...], preferred_element_type=F32) + bo[...]


def point_resnet_encode(enc, pts, idx, nb):
    # TODO(synk): exact PointResNetEncoder architecture is not in the provided
    # source; approximated as Conv1d(k=1) residual MLP + idx-segmented global
    # max pooling + mixing layer (same in/out signature and feature dim).
    n, cin = pts.shape
    tile = 128
    npad = _round_up(n, tile)
    xp = jnp.zeros((npad, cin), F32).at[:n].set(pts)
    ws = [enc["w1"].astype(BF16), enc["b1"], enc["w2a"].astype(BF16), enc["b2a"],
          enc["w2b"].astype(BF16), enc["b2b"], enc["w3a"].astype(BF16), enc["b3a"],
          enc["w3b"].astype(BF16), enc["b3b"], enc["wo"].astype(BF16), enc["bo"]]
    feat = pl.pallas_call(
        _point_resnet_kernel,
        out_shape=jax.ShapeDtypeStruct((npad, KP_FEAT), F32),
        grid=(npad // tile,),
        in_specs=[pl.BlockSpec((tile, cin), lambda i: (i, 0))]
                 + [pl.BlockSpec(w.shape, lambda i: (0, 0)) for w in ws],
        out_specs=pl.BlockSpec((tile, KP_FEAT), lambda i: (i, 0)),
        compiler_params=pltpu.CompilerParams(dimension_semantics=("parallel",)),
    )(xp, *ws)[:n]
    gmax = jax.ops.segment_max(feat, idx, num_segments=nb)
    g = gmax[idx]
    return pl_linear(jnp.concatenate([feat, g], axis=1), enc["wmix"], enc["bmix"])


# ----------------------------------------------------------------------------
# fused SC attention (pos-encoding + 3 self/cross layers in one kernel)
# ----------------------------------------------------------------------------
def _sc_att_kernel(*refs, n_layers, layer_types, scale):
    d2_ref, d3_ref, p2_ref, p3_ref, wp2, bp2, wp3, bp3 = refs[:8]
    lw = refs[8:8 + 8 * n_layers]
    o2_ref, o3_ref = refs[8 + 8 * n_layers:]

    def att(xt, xs, wq, wk, wv, w1a, w1b, b1, w2, b2):
        xtb, xsb = xt.astype(BF16), xs.astype(BF16)
        q = jnp.dot(xtb, wq[...], preferred_element_type=F32)
        k = jnp.dot(xsb, wk[...], preferred_element_type=F32)
        v = jnp.dot(xsb, wv[...], preferred_element_type=F32)
        # q @ k^T without an in-kernel transpose (contract both minor dims)
        s = lax.dot_general(q.astype(BF16), k.astype(BF16),
                            (((1,), (1,)), ((), ())),
                            preferred_element_type=F32) * scale
        s = s - jnp.max(s, axis=-1, keepdims=True)
        p = jnp.exp(s)
        p = p * pl.reciprocal(jnp.sum(p, axis=-1, keepdims=True), approx=True)
        msg = jnp.dot(p.astype(BF16), v.astype(BF16), preferred_element_type=F32)
        h = jnp.maximum(jnp.dot(xtb, w1a[...], preferred_element_type=F32)
                        + jnp.dot(msg.astype(BF16), w1b[...],
                                  preferred_element_type=F32)
                        + b1[...], 0.0)
        return xt + jnp.dot(h.astype(BF16), w2[...],
                            preferred_element_type=F32) + b2[...]

    d2 = d2_ref[...] + jnp.dot(p2_ref[...], wp2[...],
                               preferred_element_type=F32) + bp2[...]
    d3 = d3_ref[...] + jnp.dot(p3_ref[...], wp3[...],
                               preferred_element_type=F32) + bp3[...]
    for li, name in enumerate(layer_types):
        wq, wk, wv, w1a, w1b, b1, w2, b2 = lw[8 * li:8 * li + 8]
        if name == "self":
            s2, s3 = d2, d3
        else:
            s2, s3 = d3, d2
        d2, d3 = (att(d2, s2, wq, wk, wv, w1a, w1b, b1, w2, b2),
                  att(d3, s3, wq, wk, wv, w1a, w1b, b1, w2, b2))
    o2_ref[...] = d2
    o3_ref[...] = d3


def pl_sc_attention(params, d2, d3, pts2d, pts3d):
    # TODO(synk): SCAtt2D3D internals unavailable; approximated with learned
    # coordinate encodings + shared-weight self/cross attention blocks.
    n2, d = d2.shape
    n3 = d3.shape[0]
    flat = [d2, d3, pts2d, pts3d,
            params["pos2"]["w"], params["pos2"]["b"],
            params["pos3"]["w"], params["pos3"]["b"]]
    for lp in params["att"]:
        flat += [lp["wq"].astype(BF16), lp["wk"].astype(BF16), lp["wv"].astype(BF16),
                 lp["w1a"].astype(BF16), lp["w1b"].astype(BF16), lp["b1"],
                 lp["w2"].astype(BF16), lp["b2"]]
    out2, out3 = pl.pallas_call(
        functools.partial(_sc_att_kernel, n_layers=len(ATT_LAYERS),
                          layer_types=ATT_LAYERS, scale=1.0 / float(np.sqrt(d))),
        out_shape=(jax.ShapeDtypeStruct((n2, d), F32),
                   jax.ShapeDtypeStruct((n3, d), F32)),
        grid=(1,),
        in_specs=[_full_spec(a.shape) for a in flat],
        out_specs=(_full_spec((n2, d)), _full_spec((n3, d))),
        compiler_params=pltpu.CompilerParams(
            dimension_semantics=("arbitrary",),
            vmem_limit_bytes=48 * 1024 * 1024),
    )(*flat)
    return out2, out3


# ----------------------------------------------------------------------------
# fused pairwise-L2 + dustbin cost + log-domain Sinkhorn (lane-wise LSE both ways)
# ----------------------------------------------------------------------------
def _match_ot_kernel(d3_ref, d2_ref, bin_ref, o_ref, *, n3, n2, iters, lam):
    mp, npd = o_ref.shape
    d3 = d3_ref[...]
    d2 = d2_ref[...]
    bin_z = -bin_ref[0, 0] / lam

    # Gram matrices in both orientations via dot_general (no in-kernel transposes
    # of the big matrices); z and zT stay resident in VMEM for all iterations.
    g = lax.dot_general(d3, d2, (((1,), (1,)), ((), ())), preferred_element_type=F32)
    gt = lax.dot_general(d2, d3, (((1,), (1,)), ((), ())), preferred_element_type=F32)
    a3 = jnp.sum(d3 * d3, axis=1, keepdims=True)     # (mp, 1)
    a2 = jnp.sum(d2 * d2, axis=1, keepdims=True)     # (npd, 1)
    dist = jnp.sqrt(jnp.maximum(a3 + jnp.transpose(a2) - 2.0 * g, 1e-12))
    dist_t = jnp.sqrt(jnp.maximum(a2 + jnp.transpose(a3) - 2.0 * gt, 1e-12))

    r = lax.broadcasted_iota(jnp.int32, (mp, npd), 0)
    c = lax.broadcasted_iota(jnp.int32, (mp, npd), 1)
    z = jnp.where((r < n3) & (c < n2), -dist / lam, bin_z)
    z = jnp.where((r <= n3) & (c <= n2), z, NEG)
    rt = lax.broadcasted_iota(jnp.int32, (npd, mp), 0)
    ct = lax.broadcasted_iota(jnp.int32, (npd, mp), 1)
    zt = jnp.where((rt < n2) & (ct < n3), -dist_t / lam, bin_z)
    zt = jnp.where((rt <= n2) & (ct <= n3), zt, NEG)

    t = float(n3 + n2)
    ri = lax.broadcasted_iota(jnp.int32, (mp, 1), 0)
    ci = lax.broadcasted_iota(jnp.int32, (npd, 1), 0)
    lmu = jnp.where(ri < n3, -np.log(t),
                    jnp.where(ri == n3, np.log(n2) - np.log(t), NEG)).astype(F32)
    lnu = jnp.where(ci < n2, -np.log(t),
                    jnp.where(ci == n2, np.log(n3) - np.log(t), NEG)).astype(F32)

    def lse_rows(m):                                 # lane-wise logsumexp
        mx = jnp.max(m, axis=1, keepdims=True)
        return mx + jnp.log(jnp.sum(jnp.exp(m - mx), axis=1, keepdims=True))

    def body(_, carry):
        u_col, v_row = carry
        u_col = lmu - lse_rows(z + v_row)                        # (mp, 1)
        v_col = lnu - lse_rows(zt + jnp.transpose(u_col))        # (npd, 1)
        return (u_col, jnp.transpose(v_col))

    u_col, v_row = lax.fori_loop(
        0, iters, body,
        (jnp.zeros((mp, 1), F32), jnp.zeros((1, npd), F32)))
    o_ref[...] = jnp.exp(z + u_col + v_row)


def pl_match_ot(d3n, d2n, bin_score):
    n3, cdim = d3n.shape
    n2 = d2n.shape[0]
    mp = _round_up(n3 + 1, 8)
    npd = _round_up(n2 + 1, 128)
    d3p = jnp.zeros((mp, cdim), F32).at[:n3].set(d3n)
    d2p = jnp.zeros((npd, cdim), F32).at[:n2].set(d2n)
    binm = jnp.reshape(bin_score.astype(F32), (1, 1))
    scores = pl.pallas_call(
        functools.partial(_match_ot_kernel, n3=n3, n2=n2,
                          iters=SINKHORN_ITERS, lam=SINKHORN_LAMBDA),
        out_shape=jax.ShapeDtypeStruct((mp, npd), F32),
        grid=(1,),
        in_specs=[_full_spec((mp, cdim)), _full_spec((npd, cdim)), _full_spec((1, 1))],
        out_specs=_full_spec((mp, npd)),
        compiler_params=pltpu.CompilerParams(dimension_semantics=("arbitrary",)),
    )(d3p, d2p, binm)
    return scores[:n3 + 1, :n2 + 1]


# ----------------------------------------------------------------------------
# K-Means (Lloyd) entirely inside one kernel (transposed one-hot, no oh.T/cen.T)
# ----------------------------------------------------------------------------
def _kmeans_kernel(pts_ref, oht_ref, cen_ref, *, K, iters):
    pts = pts_ref[...]
    n = pts.shape[0]
    cen0 = pts[:K, :]                       # deterministic init: first K points

    def dist2(cen):
        cc = jnp.sum(cen * cen, axis=1, keepdims=True)            # (K, 1)
        g = lax.dot_general(pts, cen, (((1,), (1,)), ((), ())),
                            preferred_element_type=F32)           # (n, K)
        return jnp.transpose(cc) - 2.0 * g

    def labels_row(d2):
        col = lax.broadcasted_iota(jnp.int32, d2.shape, 1)
        dmin = jnp.min(d2, axis=1, keepdims=True)
        lbl = jnp.min(jnp.where(d2 <= dmin, col, K), axis=1)       # first argmin
        return lbl[None, :]                                        # (1, n)

    def onehot_t(lbl_row):
        return (lax.broadcasted_iota(jnp.int32, (K, n), 0) == lbl_row).astype(F32)

    def body(_, cen):
        oht = onehot_t(labels_row(dist2(cen)))                     # (K, n)
        cnt = jnp.sum(oht, axis=1, keepdims=True)                  # lane reduce
        num = jnp.dot(oht, pts, preferred_element_type=F32)        # (K, d)
        return num / jnp.maximum(cnt, 1.0)

    cen = lax.fori_loop(0, iters, body, cen0)
    oht_ref[...] = onehot_t(labels_row(dist2(cen)))
    cen_ref[...] = cen


def pl_kmeans(pts, K=CLUSTERS, iters=KMEANS_ITERS):
    n, d = pts.shape
    oht, cen = pl.pallas_call(
        functools.partial(_kmeans_kernel, K=K, iters=iters),
        out_shape=(jax.ShapeDtypeStruct((K, n), F32),
                   jax.ShapeDtypeStruct((K, d), F32)),
        grid=(1,),
        in_specs=[_full_spec((n, d))],
        out_specs=(_full_spec((K, n)), _full_spec((K, d))),
        compiler_params=pltpu.CompilerParams(dimension_semantics=("arbitrary",)),
    )(pts)
    return oht, cen


# ----------------------------------------------------------------------------
# fused dense match classifier: pair features built in-VMEM, lane-dense output
# ----------------------------------------------------------------------------
def _cls_pair_kernel(d3_ref, d2_ref, w1a, w1b, b1, w2, b2, w3, b3, o_ref, *, tm):
    f3 = d3_ref[...].astype(BF16)                      # (tm, 256)
    f2 = d2_ref[...].astype(BF16)                      # (TN, 256)
    a3 = jnp.dot(f3, w1b[...], preferred_element_type=F32)            # (tm, 128)
    a2 = jnp.dot(f2, w1a[...], preferred_element_type=F32) + b1[...]  # (TN, 128)
    for i in range(tm):                                # short fixed unrolled loop
        h = jnp.maximum(a2 + a3[i:i + 1, :], 0.0)                      # (TN, 128)
        h2 = jnp.maximum(jnp.dot(h.astype(BF16), w2[...],
                                 preferred_element_type=F32) + b2[...], 0.0)
        logit = jnp.dot(h2.astype(BF16), w3[...],
                        preferred_element_type=F32) + b3[...]          # (TN, 1)
        o_ref[i:i + 1, :] = jnp.transpose(jax.nn.sigmoid(logit))       # row store


def pl_classifier_pairs(d2n, d3n, cp):
    # TODO(synk): MatchCls2D3D internals unavailable; approximated as an MLP on
    # concat(f2d, f3d) with sigmoid output, evaluated densely for every pair.
    n3, c = d3n.shape
    n2 = d2n.shape[0]
    tm, tn = 8, 128
    n3p = _round_up(n3, tm)
    n2p = _round_up(n2, tn)
    d3p = jnp.zeros((n3p, c), F32).at[:n3].set(d3n)
    d2p = jnp.zeros((n2p, c), F32).at[:n2].set(d2n)
    ws = [cp["w1a"].astype(BF16), cp["w1b"].astype(BF16), cp["b1"],
          cp["w2"].astype(BF16), cp["b2"], cp["w3"].astype(BF16), cp["b3"]]
    probs = pl.pallas_call(
        functools.partial(_cls_pair_kernel, tm=tm),
        out_shape=jax.ShapeDtypeStruct((n3p, n2p), F32),
        grid=(n3p // tm, n2p // tn),
        in_specs=[pl.BlockSpec((tm, c), lambda i, j: (i, 0)),
                  pl.BlockSpec((tn, c), lambda i, j: (j, 0))]
                 + [pl.BlockSpec(w.shape, lambda i, j: (0, 0)) for w in ws],
        out_specs=pl.BlockSpec((tm, tn), lambda i, j: (i, j)),
        compiler_params=pltpu.CompilerParams(
            dimension_semantics=("parallel", "parallel")),
    )(d3p, d2p, *ws)
    return probs[:n3, :n2]


# ----------------------------------------------------------------------------
# parameters (deterministic synthetic init)
# ----------------------------------------------------------------------------
def _dense(key, cin, cout):
    w = jax.random.normal(key, (cin, cout), F32) / np.sqrt(cin)
    b = jnp.zeros((1, cout), F32)
    return w, b


def init_point_encoder(key, in_ch, hidden=64, feat=KP_FEAT):
    ks = jax.random.split(key, 7)
    p = {}
    p["w1"], p["b1"] = _dense(ks[0], in_ch, hidden)
    p["w2a"], p["b2a"] = _dense(ks[1], hidden, hidden)
    p["w2b"], p["b2b"] = _dense(ks[2], hidden, hidden)
    p["w3a"], p["b3a"] = _dense(ks[3], hidden, hidden)
    p["w3b"], p["b3b"] = _dense(ks[4], hidden, hidden)
    p["wo"], p["bo"] = _dense(ks[5], hidden, feat)
    p["wmix"], p["bmix"] = _dense(ks[6], 2 * feat, feat)
    return p


def init_att_layer(key, d=ATT_DIM):
    ks = jax.random.split(key, 6)
    lp = {}
    lp["wq"], _ = _dense(ks[0], d, d)
    lp["wk"], _ = _dense(ks[1], d, d)
    lp["wv"], _ = _dense(ks[2], d, d)
    lp["w1a"], lp["b1"] = _dense(ks[3], d, d)
    lp["w1b"], _ = _dense(ks[4], d, d)
    lp["w2"], lp["b2"] = _dense(ks[5], d, d)
    return lp


def init_params(key):
    ks = jax.random.split(key, 10)
    params = {
        "kp2d_enc": init_point_encoder(ks[0], 2),
        "kp3d_enc": init_point_encoder(ks[1], 3),   # share_kp2d_enc=False, p3d coords
        "gcn": dict(zip(("w", "b"), _dense(ks[2], KP_FEAT, KP_FEAT))),
        "pos2": dict(zip(("w", "b"), _dense(ks[3], 2, ATT_DIM))),
        "pos3": dict(zip(("w", "b"), _dense(ks[4], 3, ATT_DIM))),
        "att": [init_att_layer(k) for k in jax.random.split(ks[5], len(ATT_LAYERS))],
        "bin_score": jnp.asarray(BIN_SCORE, F32),
    }
    cls = {}
    cls["w1a"], cls["b1"] = _dense(ks[6], ATT_DIM, 128)
    cls["w1b"], _ = _dense(ks[7], ATT_DIM, 128)
    cls["w2"], cls["b2"] = _dense(ks[8], 128, 64)
    cls["w3"], cls["b3"] = _dense(ks[9], 64, 1)
    params["cls"] = cls
    return params


# ----------------------------------------------------------------------------
# model glue (plain JAX around the Pallas kernels)
# ----------------------------------------------------------------------------
def l2norm(x, axis):
    return x / jnp.sqrt(jnp.sum(x * x, axis=axis, keepdims=True) + 1e-12)


def knn_adjacency(coords, k):
    K = coords.shape[0]
    d2 = jnp.sum((coords[:, None, :] - coords[None, :, :]) ** 2, axis=-1)
    nbr = jnp.argsort(d2, axis=1)[:, : k + 1]   # self + k nearest
    a = jnp.zeros((K, K), F32).at[jnp.arange(K)[:, None], nbr].set(1.0)
    return a / jnp.sum(a, axis=1, keepdims=True)


def classify_sample(params, desc2d, desc3d, iscores):
    # Dense equivalent of mutual_assignment + per-match classifier: probabilities
    # are evaluated for every (3d, 2d) pair inside the fused kernel and masked with
    # the mutual-NN mask; non-mutual entries and dustbins stay at -1.
    n3, n2 = iscores.shape[0] - 1, iscores.shape[1] - 1
    p = iscores[:n3, :n2]
    row_arg = jnp.argmax(p, axis=1)
    col_arg = jnp.argmax(p, axis=0)
    mutual = (jax.nn.one_hot(row_arg, n2) * jax.nn.one_hot(col_arg, n3).T) > 0.5
    probs = pl_classifier_pairs(desc2d, desc3d, params["cls"])
    dense = jnp.where(mutual, probs, -1.0)
    return jnp.full((n3 + 1, n2 + 1), -1.0, F32).at[:n3, :n2].set(dense)


@functools.partial(jax.jit, static_argnums=0)
def encode_all(nb, params, pts2d, idx2d, pts3d, idx3d):
    # TODO(synk): color_enc / add_semantic branches skipped — GoMatchCoords.forward
    # passes no color tensors to OTMatcherCls.forward.
    desc2d = point_resnet_encode(params["kp2d_enc"], pts2d, idx2d, nb)
    desc3d = point_resnet_encode(params["kp3d_enc"], pts3d, idx3d, nb)
    return desc2d, desc3d


@jax.jit
def process_sample(params, ipts2d, ipts3d, idesc2d, idesc3d):
    # feature_norm
    idesc2d = l2norm(idesc2d, axis=1)
    idesc3d = l2norm(idesc3d, axis=1)
    # KMeans (Pallas) + cluster encodings + coarse GCN (tiny matmuls kept in glue)
    oht2, c2d = pl_kmeans(ipts2d)
    oht3, c3d = pl_kmeans(ipts3d)

    def gcn_enc(oht, desc, centers):
        cnt = jnp.maximum(jnp.sum(oht, axis=1, keepdims=True), 1.0)
        enc = jnp.dot(oht, desc) / cnt                                 # (K, 128)
        a = knn_adjacency(centers, GCN_K)
        h = jnp.dot(enc, params["gcn"]["w"]) + params["gcn"]["b"]
        return jax.nn.relu(jnp.dot(a, h))

    g2d = gcn_enc(oht2, idesc2d, c2d)
    g3d = gcn_enc(oht3, idesc3d, c3d)
    idesc2d = jnp.concatenate([idesc2d, jnp.dot(oht2.T, g2d)], axis=1)   # (n2, 256)
    idesc3d = jnp.concatenate([idesc3d, jnp.dot(oht3.T, g3d)], axis=1)   # (n3, 256)
    # fused SC attention; Hier_Matcher treated as identity (definition unavailable)
    d2, d3 = pl_sc_attention(params, idesc2d, idesc3d, ipts2d, ipts3d)
    d2 = l2norm(d2, axis=1)
    d3 = l2norm(d3, axis=1)
    # fused pairwise-L2 + dustbin cost + Sinkhorn
    iscores = pl_match_ot(d3, d2, params["bin_score"])
    match_probs = classify_sample(params, d2, d3, iscores)
    return iscores, match_probs


def gomatch_coords_forward(params, pts2d, idx2d, pts3d, idx3d):
    idx2d_np = np.asarray(idx2d)
    idx3d_np = np.asarray(idx3d)
    nb = int(len(np.unique(idx2d_np)))
    desc2d, desc3d = encode_all(nb, params, pts2d, idx2d, pts3d, idx3d)
    scores_b, match_probs_b = [], []
    for ib in range(nb):
        m2 = idx2d_np == ib
        m3 = idx3d_np == ib
        iscores, probs = process_sample(params, pts2d[m2], pts3d[m3],
                                        desc2d[m2], desc3d[m3])
        scores_b.append(iscores)
        match_probs_b.append(probs)
    return scores_b, match_probs_b


if __name__ == "__main__":
    key = jax.random.PRNGKey(0)
    kp, k2, k3 = jax.random.split(key, 3)
    params = init_params(kp)

    n2_sizes = [24, 20]   # 2D keypoints per batch sample
    n3_sizes = [20, 28]   # 3D points per batch sample
    pts2d = jax.random.uniform(k2, (sum(n2_sizes), 2), F32)
    pts3d = jax.random.normal(k3, (sum(n3_sizes), 3), F32)
    idx2d = jnp.concatenate([jnp.full((s,), i, jnp.int32) for i, s in enumerate(n2_sizes)])
    idx3d = jnp.concatenate([jnp.full((s,), i, jnp.int32) for i, s in enumerate(n3_sizes)])

    scores_b, match_probs_b = gomatch_coords_forward(params, pts2d, idx2d, pts3d, idx3d)
    for t in scores_b + match_probs_b:
        jax.block_until_ready(t)

    assert len(scores_b) == len(n2_sizes)
    for ib in range(len(n2_sizes)):
        assert scores_b[ib].shape == (n3_sizes[ib] + 1, n2_sizes[ib] + 1)
        assert match_probs_b[ib].shape == scores_b[ib].shape
        assert np.all(np.isfinite(np.asarray(scores_b[ib])))
        assert np.all(np.isfinite(np.asarray(match_probs_b[ib])))
    print("KERNEL_OK")
</pallas_src>

<mosaic_0001>
module attributes {stable_mosaic.version = 11 : i64} {
  func.func @_point_resnet_kernel(%arg0: i32, %arg1: memref<128x3xf32, #tpu.memory_space<vmem>>, %arg2: memref<3x64xbf16, #tpu.memory_space<vmem>>, %arg3: memref<1x64xf32, #tpu.memory_space<vmem>>, %arg4: memref<64x64xbf16, #tpu.memory_space<vmem>>, %arg5: memref<1x64xf32, #tpu.memory_space<vmem>>, %arg6: memref<64x64xbf16, #tpu.memory_space<vmem>>, %arg7: memref<1x64xf32, #tpu.memory_space<vmem>>, %arg8: memref<64x64xbf16, #tpu.memory_space<vmem>>, %arg9: memref<1x64xf32, #tpu.memory_space<vmem>>, %arg10: memref<64x64xbf16, #tpu.memory_space<vmem>>, %arg11: memref<1x64xf32, #tpu.memory_space<vmem>>, %arg12: memref<64x128xbf16, #tpu.memory_space<vmem>>, %arg13: memref<1x128xf32, #tpu.memory_space<vmem>>, %arg14: memref<128x128xf32, #tpu.memory_space<vmem>>) attributes {dimension_semantics = [#tpu.dimension_semantics<parallel>], iteration_bounds = array<i64: 1>, scalar_prefetch = 0 : i64, scratch_operands = 0 : i64, tpu.core_type = #tpu.core_type<tc>, window_params = [{transform_indices = @transform_0, window_bounds = array<i64: 128, 3>}, {pipeline_mode = #tpu.pipeline_mode<synchronous>, transform_indices = @transform_1, window_bounds = array<i64: 3, 64>}, {pipeline_mode = #tpu.pipeline_mode<synchronous>, transform_indices = @transform_2, window_bounds = array<i64: 1, 64>}, {pipeline_mode = #tpu.pipeline_mode<synchronous>, transform_indices = @transform_3, window_bounds = array<i64: 64, 64>}, {pipeline_mode = #tpu.pipeline_mode<synchronous>, transform_indices = @transform_4, window_bounds = array<i64: 1, 64>}, {pipeline_mode = #tpu.pipeline_mode<synchronous>, transform_indices = @transform_5, window_bounds = array<i64: 64, 64>}, {pipeline_mode = #tpu.pipeline_mode<synchronous>, transform_indices = @transform_6, window_bounds = array<i64: 1, 64>}, {pipeline_mode = #tpu.pipeline_mode<synchronous>, transform_indices = @transform_7, window_bounds = array<i64: 64, 64>}, {pipeline_mode = #tpu.pipeline_mode<synchronous>, transform_indices = @transform_8, window_bounds = array<i64: 1, 64>}, {pipeline_mode = #tpu.pipeline_mode<synchronous>, transform_indices = @transform_9, window_bounds = array<i64: 64, 64>}, {pipeline_mode = #tpu.pipeline_mode<synchronous>, transform_indices = @transform_10, window_bounds = array<i64: 1, 64>}, {pipeline_mode = #tpu.pipeline_mode<synchronous>, transform_indices = @transform_11, window_bounds = array<i64: 64, 128>}, {pipeline_mode = #tpu.pipeline_mode<synchronous>, transform_indices = @transform_12, window_bounds = array<i64: 1, 128>}, {transform_indices = @transform_13, window_bounds = array<i64: 128, 128>}]} {
    %c0 = arith.constant 0 : index
    %c0_0 = arith.constant 0 : index
    %0 = vector.load %arg1[%c0, %c0_0] : memref<128x3xf32, #tpu.memory_space<vmem>>, vector<128x3xf32>
    %1 = arith.truncf %0 : vector<128x3xf32> to vector<128x3xbf16>
    %c0_1 = arith.constant 0 : index
    %c0_2 = arith.constant 0 : index
    %2 = vector.load %arg2[%c0_1, %c0_2] : memref<3x64xbf16, #tpu.memory_space<vmem>>, vector<3x64xbf16>
    %cst = arith.constant dense<0.000000e+00> : vector<128x64xf32>
    %3 = tpu.matmul %1, %2, %cst {dimension_numbers = #tpu.dot_dimension_numbers<[1], [0], [0], [1], [0, 0, 1, 1], [], []>} : vector<128x3xbf16>, vector<3x64xbf16>, vector<128x64xf32> -> vector<128x64xf32>
    %c0_3 = arith.constant 0 : index
    %c0_4 = arith.constant 0 : index
    %4 = vector.load %arg3[%c0_3, %c0_4] : memref<1x64xf32, #tpu.memory_space<vmem>>, vector<1x64xf32>
    %5 = vector.broadcast %4 : vector<1x64xf32> to vector<128x64xf32>
    %6 = arith.addf %3, %5 : vector<128x64xf32>
    %cst_5 = arith.constant 0.000000e+00 : f32
    %7 = vector.broadcast %cst_5 : f32 to vector<128x64xf32>
    %8 = arith.maximumf %6, %7 : vector<128x64xf32>
    %9 = arith.truncf %8 : vector<128x64xf32> to vector<128x64xbf16>
    %c0_6 = arith.constant 0 : index
    %c0_7 = arith.constant 0 : index
    %10 = vector.load %arg4[%c0_6, %c0_7] : memref<64x64xbf16, #tpu.memory_space<vmem>>, vector<64x64xbf16>
    %cst_8 = arith.constant dense<0.000000e+00> : vector<128x64xf32>
    %11 = tpu.matmul %9, %10, %cst_8 {dimension_numbers = #tpu.dot_dimension_numbers<[1], [0], [0], [1], [0, 0, 1, 1], [], []>} : vector<128x64xbf16>, vector<64x64xbf16>, vector<128x64xf32> -> vector<128x64xf32>
    %c0_9 = arith.constant 0 : index
    %c0_10 = arith.constant 0 : index
    %12 = vector.load %arg5[%c0_9, %c0_10] : memref<1x64xf32, #tpu.memory_space<vmem>>, vector<1x64xf32>
    %13 = vector.broadcast %12 : vector<1x64xf32> to vector<128x64xf32>
    %14 = arith.addf %11, %13 : vector<128x64xf32>
    %cst_11 = arith.constant 0.000000e+00 : f32
    %15 = vector.broadcast %cst_11 : f32 to vector<128x64xf32>
    %16 = arith.maximumf %14, %15 : vector<128x64xf32>
    %17 = arith.truncf %16 : vector<128x64xf32> to vector<128x64xbf16>
    %c0_12 = arith.constant 0 : index
    %c0_13 = arith.constant 0 : index
    %18 = vector.load %arg6[%c0_12, %c0_13] : memref<64x64xbf16, #tpu.memory_space<vmem>>, vector<64x64xbf16>
    %cst_14 = arith.constant dense<0.000000e+00> : vector<128x64xf32>
    %19 = tpu.matmul %17, %18, %cst_14 {dimension_numbers = #tpu.dot_dimension_numbers<[1], [0], [0], [1], [0, 0, 1, 1], [], []>} : vector<128x64xbf16>, vector<64x64xbf16>, vector<128x64xf32> -> vector<128x64xf32>
    %c0_15 = arith.constant 0 : index
    %c0_16 = arith.constant 0 : index
    %20 = vector.load %arg7[%c0_15, %c0_16] : memref<1x64xf32, #tpu.memory_space<vmem>>, vector<1x64xf32>
    %21 = vector.broadcast %20 : vector<1x64xf32> to vector<128x64xf32>
    %22 = arith.addf %19, %21 : vector<128x64xf32>
    %23 = arith.addf %8, %22 : vector<128x64xf32>
    %cst_17 = arith.constant 0.000000e+00 : f32
    %24 = vector.broadcast %cst_17 : f32 to vector<128x64xf32>
    %25 = arith.maximumf %23, %24 : vector<128x64xf32>
    %26 = arith.truncf %25 : vector<128x64xf32> to vector<128x64xbf16>
    %c0_18 = arith.constant 0 : index
    %c0_19 = arith.constant 0 : index
    %27 = vector.load %arg8[%c0_18, %c0_19] : memref<64x64xbf16, #tpu.memory_space<vmem>>, vector<64x64xbf16>
    %cst_20 = arith.constant dense<0.000000e+00> : vector<128x64xf32>
    %28 = tpu.matmul %26, %27, %cst_20 {dimension_numbers = #tpu.dot_dimension_numbers<[1], [0], [0], [1], [0, 0, 1, 1], [], []>} : vector<128x64xbf16>, vector<64x64xbf16>, vector<128x64xf32> -> vector<128x64xf32>
    %c0_21 = arith.constant 0 : index
    %c0_22 = arith.constant 0 : index
    %29 = vector.load %arg9[%c0_21, %c0_22] : memref<1x64xf32, #tpu.memory_space<vmem>>, vector<1x64xf32>
    %30 = vector.broadcast %29 : vector<1x64xf32> to vector<128x64xf32>
    %31 = arith.addf %28, %30 : vector<128x64xf32>
    %cst_23 = arith.constant 0.000000e+00 : f32
    %32 = vector.broadcast %cst_23 : f32 to vector<128x64xf32>
    %33 = arith.maximumf %31, %32 : vector<128x64xf32>
    %34 = arith.truncf %33 : vector<128x64xf32> to vector<128x64xbf16>
    %c0_24 = arith.constant 0 : index
    %c0_25 = arith.constant 0 : index
    %35 = vector.load %arg10[%c0_24, %c0_25] : memref<64x64xbf16, #tpu.memory_space<vmem>>, vector<64x64xbf16>
    %cst_26 = arith.constant dense<0.000000e+00> : vector<128x64xf32>
    %36 = tpu.matmul %34, %35, %cst_26 {dimension_numbers = #tpu.dot_dimension_numbers<[1], [0], [0], [1], [0, 0, 1, 1], [], []>} : vector<128x64xbf16>, vector<64x64xbf16>, vector<128x64xf32> -> vector<128x64xf32>
    %c0_27 = arith.constant 0 : index
    %c0_28 = arith.constant 0 : index
    %37 = vector.load %arg11[%c0_27, %c0_28] : memref<1x64xf32, #tpu.memory_space<vmem>>, vector<1x64xf32>
    %38 = vector.broadcast %37 : vector<1x64xf32> to vector<128x64xf32>
    %39 = arith.addf %36, %38 : vector<128x64xf32>
    %40 = arith.addf %25, %39 : vector<128x64xf32>
    %cst_29 = arith.constant 0.000000e+00 : f32
    %41 = vector.broadcast %cst_29 : f32 to vector<128x64xf32>
    %42 = arith.maximumf %40, %41 : vector<128x64xf32>
    %43 = arith.truncf %42 : vector<128x64xf32> to vector<128x64xbf16>
    %c0_30 = arith.constant 0 : index
    %c0_31 = arith.constant 0 : index
    %44 = vector.load %arg12[%c0_30, %c0_31] : memref<64x128xbf16, #tpu.memory_space<vmem>>, vector<64x128xbf16>
    %cst_32 = arith.constant dense<0.000000e+00> : vector<128x128xf32>
    %45 = tpu.matmul %43, %44, %cst_32 {dimension_numbers = #tpu.dot_dimension_numbers<[1], [0], [0], [1], [0, 0, 1, 1], [], []>} : vector<128x64xbf16>, vector<64x128xbf16>, vector<128x128xf32> -> vector<128x128xf32>
    %c0_33 = arith.constant 0 : index
    %c0_34 = arith.constant 0 : index
    %46 = vector.load %arg13[%c0_33, %c0_34] : memref<1x128xf32, #tpu.memory_space<vmem>>, vector<1x128xf32>
    %47 = vector.broadcast %46 : vector<1x128xf32> to vector<128x128xf32>
    %48 = arith.addf %45, %47 : vector<128x128xf32>
    %c0_35 = arith.constant 0 : index
    %c0_36 = arith.constant 0 : index
    %49 = vector.load %arg14[%c0_35, %c0_36] : memref<128x128xf32, #tpu.memory_space<vmem>>, vector<128x128xf32>
    tpu.vector_store %arg14[%c0_35, %c0_36], %48 {strides = array<i32>} : memref<128x128xf32, #tpu.memory_space<vmem>>, vector<128x128xf32>,
    return
  }
  func.func @transform_0(%arg0: i32) -> (i32, i32) {
    %c0_i32 = arith.constant 0 : i32
    %c0_i32_0 = arith.constant 0 : i32
    return %arg0, %c0_i32 : i32, i32
  }
  func.func @transform_1(%arg0: i32) -> (i32, i32) {
    %c0_i32 = arith.constant 0 : i32
    %c0_i32_0 = arith.constant 0 : i32
    %c0_i32_1 = arith.constant 0 : i32
    return %c0_i32, %c0_i32_0 : i32, i32
  }
  func.func @transform_2(%arg0: i32) -> (i32, i32) {
    %c0_i32 = arith.constant 0 : i32
    %c0_i32_0 = arith.constant 0 : i32
    %c0_i32_1 = arith.constant 0 : i32
    return %c0_i32, %c0_i32_0 : i32, i32
  }
  func.func @transform_3(%arg0: i32) -> (i32, i32) {
    %c0_i32 = arith.constant 0 : i32
    %c0_i32_0 = arith.constant 0 : i32
    %c0_i32_1 = arith.constant 0 : i32
    return %c0_i32, %c0_i32_0 : i32, i32
  }
  func.func @transform_4(%arg0: i32) -> (i32, i32) {
    %c0_i32 = arith.constant 0 : i32
    %c0_i32_0 = arith.constant 0 : i32
    %c0_i32_1 = arith.constant 0 : i32
    return %c0_i32, %c0_i32_0 : i32, i32
  }
  func.func @transform_5(%arg0: i32) -> (i32, i32) {
    %c0_i32 = arith.constant 0 : i32
    %c0_i32_0 = arith.constant 0 : i32
    %c0_i32_1 = arith.constant 0 : i32
    return %c0_i32, %c0_i32_0 : i32, i32
  }
  func.func @transform_6(%arg0: i32) -> (i32, i32) {
    %c0_i32 = arith.constant 0 : i32
    %c0_i32_0 = arith.constant 0 : i32
    %c0_i32_1 = arith.constant 0 : i32
    return %c0_i32, %c0_i32_0 : i32, i32
  }
  func.func @transform_7(%arg0: i32) -> (i32, i32) {
    %c0_i32 = arith.constant 0 : i32
    %c0_i32_0 = arith.constant 0 : i32
    %c0_i32_1 = arith.constant 0 : i32
    return %c0_i32, %c0_i32_0 : i32, i32
  }
  func.func @transform_8(%arg0: i32) -> (i32, i32) {
    %c0_i32 = arith.constant 0 : i32
    %c0_i32_0 = arith.constant 0 : i32
    %c0_i32_1 = arith.constant 0 : i32
    return %c0_i32, %c0_i32_0 : i32, i32
  }
  func.func @transform_9(%arg0: i32) -> (i32, i32) {
    %c0_i32 = arith.constant 0 : i32
    %c0_i32_0 = arith.constant 0 : i32
    %c0_i32_1 = arith.constant 0 : i32
    return %c0_i32, %c0_i32_0 : i32, i32
  }
  func.func @transform_10(%arg0: i32) -> (i32, i32) {
    %c0_i32 = arith.constant 0 : i32
    %c0_i32_0 = arith.constant 0 : i32
    %c0_i32_1 = arith.constant 0 : i32
    return %c0_i32, %c0_i32_0 : i32, i32
  }
  func.func @transform_11(%arg0: i32) -> (i32, i32) {
    %c0_i32 = arith.constant 0 : i32
    %c0_i32_0 = arith.constant 0 : i32
    %c0_i32_1 = arith.constant 0 : i32
    return %c0_i32, %c0_i32_0 : i32, i32
  }
  func.func @transform_12(%arg0: i32) -> (i32, i32) {
    %c0_i32 = arith.constant 0 : i32
    %c0_i32_0 = arith.constant 0 : i32
    %c0_i32_1 = arith.constant 0 : i32
    return %c0_i32, %c0_i32_0 : i32, i32
  }
  func.func @transform_13(%arg0: i32) -> (i32, i32) {
    %c0_i32 = arith.constant 0 : i32
    %c0_i32_0 = arith.constant 0 : i32
    return %arg0, %c0_i32 : i32, i32
  }
}

module attributes {stable_mosaic.version = 11 : i64} {
  func.func @_linear_kernel(%arg0: i32, %arg1: memref<128x256xf32, #tpu.memory_space<vmem>>, %arg2: memref<256x128xbf16, #tpu.memory_space<vmem>>, %arg3: memref<1x128xf32, #tpu.memory_space<vmem>>, %arg4: memref<128x128xf32, #tpu.memory_space<vmem>>) attributes {dimension_semantics = [#tpu.dimension_semantics<parallel>], iteration_bounds = array<i64: 1>, scalar_prefetch = 0 : i64, scratch_operands = 0 : i64, tpu.core_type = #tpu.core_type<tc>, window_params = [{transform_indices = @transform_0, window_bounds = array<i64: 128, 256>}, {pipeline_mode = #tpu.pipeline_mode<synchronous>, transform_indices = @transform_1, window_bounds = array<i64: 256, 128>}, {pipeline_mode = #tpu.pipeline_mode<synchronous>, transform_indices = @transform_2, window_bounds = array<i64: 1, 128>}, {transform_indices = @transform_3, window_bounds = array<i64: 128, 128>}]} {
    %c0 = arith.constant 0 : index
    %c0_0 = arith.constant 0 : index
    %0 = vector.load %arg1[%c0, %c0_0] : memref<128x256xf32, #tpu.memory_space<vmem>>, vector<128x256xf32>
    %1 = arith.truncf %0 : vector<128x256xf32> to vector<128x256xbf16>
    %c0_1 = arith.constant 0 : index
    %c0_2 = arith.constant 0 : index
    %2 = vector.load %arg2[%c0_1, %c0_2] : memref<256x128xbf16, #tpu.memory_space<vmem>>, vector<256x128xbf16>
    %cst = arith.constant dense<0.000000e+00> : vector<128x128xf32>
    %3 = tpu.matmul %1, %2, %cst {dimension_numbers = #tpu.dot_dimension_numbers<[1], [0], [0], [1], [0, 0, 1, 1], [], []>} : vector<128x256xbf16>, vector<256x128xbf16>, vector<128x128xf32> -> vector<128x128xf32>
    %c0_3 = arith.constant 0 : index
    %c0_4 = arith.constant 0 : index
    %4 = vector.load %arg3[%c0_3, %c0_4] : memref<1x128xf32, #tpu.memory_space<vmem>>, vector<1x128xf32>
    %5 = vector.broadcast %4 : vector<1x128xf32> to vector<128x128xf32>
    %6 = arith.addf %3, %5 : vector<128x128xf32>
    %c0_5 = arith.constant 0 : index
    %c0_6 = arith.constant 0 : index
    %7 = vector.load %arg4[%c0_5, %c0_6] : memref<128x128xf32, #tpu.memory_space<vmem>>, vector<128x128xf32>
    tpu.vector_store %arg4[%c0_5, %c0_6], %6 {strides = array<i32>} : memref<128x128xf32, #tpu.memory_space<vmem>>, vector<128x128xf32>,
    return
  }
  func.func @transform_0(%arg0: i32) -> (i32, i32) {
    %c0_i32 = arith.constant 0 : i32
    %c0_i32_0 = arith.constant 0 : i32
    return %arg0, %c0_i32 : i32, i32
  }
  func.func @transform_1(%arg0: i32) -> (i32, i32) {
    %c0_i32 = arith.constant 0 : i32
    %c0_i32_0 = arith.constant 0 : i32
    %c0_i32_1 = arith.constant 0 : i32
    return %c0_i32, %c0_i32_0 : i32, i32
  }
  func.func @transform_2(%arg0: i32) -> (i32, i32) {
    %c0_i32 = arith.constant 0 : i32
    %c0_i32_0 = arith.constant 0 : i32
    %c0_i32_1 = arith.constant 0 : i32
    return %c0_i32, %c0_i32_0 : i32, i32
  }
  func.func @transform_3(%arg0: i32) -> (i32, i32) {
    %c0_i32 = arith.constant 0 : i32
    %c0_i32_0 = arith.constant 0 : i32
    return %arg0, %c0_i32 : i32, i32
  }
}

module attributes {stable_mosaic.version = 11 : i64} {
  func.func @_point_resnet_kernel(%arg0: i32, %arg1: memref<128x2xf32, #tpu.memory_space<vmem>>, %arg2: memref<2x64xbf16, #tpu.memory_space<vmem>>, %arg3: memref<1x64xf32, #tpu.memory_space<vmem>>, %arg4: memref<64x64xbf16, #tpu.memory_space<vmem>>, %arg5: memref<1x64xf32, #tpu.memory_space<vmem>>, %arg6: memref<64x64xbf16, #tpu.memory_space<vmem>>, %arg7: memref<1x64xf32, #tpu.memory_space<vmem>>, %arg8: memref<64x64xbf16, #tpu.memory_space<vmem>>, %arg9: memref<1x64xf32, #tpu.memory_space<vmem>>, %arg10: memref<64x64xbf16, #tpu.memory_space<vmem>>, %arg11: memref<1x64xf32, #tpu.memory_space<vmem>>, %arg12: memref<64x128xbf16, #tpu.memory_space<vmem>>, %arg13: memref<1x128xf32, #tpu.memory_space<vmem>>, %arg14: memref<128x128xf32, #tpu.memory_space<vmem>>) attributes {dimension_semantics = [#tpu.dimension_semantics<parallel>], iteration_bounds = array<i64: 1>, scalar_prefetch = 0 : i64, scratch_operands = 0 : i64, tpu.core_type = #tpu.core_type<tc>, window_params = [{transform_indices = @transform_0, window_bounds = array<i64: 128, 2>}, {pipeline_mode = #tpu.pipeline_mode<synchronous>, transform_indices = @transform_1, window_bounds = array<i64: 2, 64>}, {pipeline_mode = #tpu.pipeline_mode<synchronous>, transform_indices = @transform_2, window_bounds = array<i64: 1, 64>}, {pipeline_mode = #tpu.pipeline_mode<synchronous>, transform_indices = @transform_3, window_bounds = array<i64: 64, 64>}, {pipeline_mode = #tpu.pipeline_mode<synchronous>, transform_indices = @transform_4, window_bounds = array<i64: 1, 64>}, {pipeline_mode = #tpu.pipeline_mode<synchronous>, transform_indices = @transform_5, window_bounds = array<i64: 64, 64>}, {pipeline_mode = #tpu.pipeline_mode<synchronous>, transform_indices = @transform_6, window_bounds = array<i64: 1, 64>}, {pipeline_mode = #tpu.pipeline_mode<synchronous>, transform_indices = @transform_7, window_bounds = array<i64: 64, 64>}, {pipeline_mode = #tpu.pipeline_mode<synchronous>, transform_indices = @transform_8, window_bounds = array<i64: 1, 64>}, {pipeline_mode = #tpu.pipeline_mode<synchronous>, transform_indices = @transform_9, window_bounds = array<i64: 64, 64>}, {pipeline_mode = #tpu.pipeline_mode<synchronous>, transform_indices = @transform_10, window_bounds = array<i64: 1, 64>}, {pipeline_mode = #tpu.pipeline_mode<synchronous>, transform_indices = @transform_11, window_bounds = array<i64: 64, 128>}, {pipeline_mode = #tpu.pipeline_mode<synchronous>, transform_indices = @transform_12, window_bounds = array<i64: 1, 128>}, {transform_indices = @transform_13, window_bounds = array<i64: 128, 128>}]} {
    %c0 = arith.constant 0 : index
    %c0_0 = arith.constant 0 : index
    %0 = vector.load %arg1[%c0, %c0_0] : memref<128x2xf32, #tpu.memory_space<vmem>>, vector<128x2xf32>
    %1 = arith.truncf %0 : vector<128x2xf32> to vector<128x2xbf16>
    %c0_1 = arith.constant 0 : index
    %c0_2 = arith.constant 0 : index
    %2 = vector.load %arg2[%c0_1, %c0_2] : memref<2x64xbf16, #tpu.memory_space<vmem>>, vector<2x64xbf16>
    %cst = arith.constant dense<0.000000e+00> : vector<128x64xf32>
    %3 = tpu.matmul %1, %2, %cst {dimension_numbers = #tpu.dot_dimension_numbers<[1], [0], [0], [1], [0, 0, 1, 1], [], []>} : vector<128x2xbf16>, vector<2x64xbf16>, vector<128x64xf32> -> vector<128x64xf32>
    %c0_3 = arith.constant 0 : index
    %c0_4 = arith.constant 0 : index
    %4 = vector.load %arg3[%c0_3, %c0_4] : memref<1x64xf32, #tpu.memory_space<vmem>>, vector<1x64xf32>
    %5 = vector.broadcast %4 : vector<1x64xf32> to vector<128x64xf32>
    %6 = arith.addf %3, %5 : vector<128x64xf32>
    %cst_5 = arith.constant 0.000000e+00 : f32
    %7 = vector.broadcast %cst_5 : f32 to vector<128x64xf32>
    %8 = arith.maximumf %6, %7 : vector<128x64xf32>
    %9 = arith.truncf %8 : vector<128x64xf32> to vector<128x64xbf16>
    %c0_6 = arith.constant 0 : index
    %c0_7 = arith.constant 0 : index
    %10 = vector.load %arg4[%c0_6, %c0_7] : memref<64x64xbf16, #tpu.memory_space<vmem>>, vector<64x64xbf16>
    %cst_8 = arith.constant dense<0.000000e+00> : vector<128x64xf32>
    %11 = tpu.matmul %9, %10, %cst_8 {dimension_numbers = #tpu.dot_dimension_numbers<[1], [0], [0], [1], [0, 0, 1, 1], [], []>} : vector<128x64xbf16>, vector<64x64xbf16>, vector<128x64xf32> -> vector<128x64xf32>
    %c0_9 = arith.constant 0 : index
    %c0_10 = arith.constant 0 : index
    %12 = vector.load %arg5[%c0_9, %c0_10] : memref<1x64xf32, #tpu.memory_space<vmem>>, vector<1x64xf32>
    %13 = vector.broadcast %12 : vector<1x64xf32> to vector<128x64xf32>
    %14 = arith.addf %11, %13 : vector<128x64xf32>
    %cst_11 = arith.constant 0.000000e+00 : f32
    %15 = vector.broadcast %cst_11 : f32 to vector<128x64xf32>
    %16 = arith.maximumf %14, %15 : vector<128x64xf32>
    %17 = arith.truncf %16 : vector<128x64xf32> to vector<128x64xbf16>
    %c0_12 = arith.constant 0 : index
    %c0_13 = arith.constant 0 : index
    %18 = vector.load %arg6[%c0_12, %c0_13] : memref<64x64xbf16, #tpu.memory_space<vmem>>, vector<64x64xbf16>
    %cst_14 = arith.constant dense<0.000000e+00> : vector<128x64xf32>
    %19 = tpu.matmul %17, %18, %cst_14 {dimension_numbers = #tpu.dot_dimension_numbers<[1], [0], [0], [1], [0, 0, 1, 1], [], []>} : vector<128x64xbf16>, vector<64x64xbf16>, vector<128x64xf32> -> vector<128x64xf32>
    %c0_15 = arith.constant 0 : index
    %c0_16 = arith.constant 0 : index
    %20 = vector.load %arg7[%c0_15, %c0_16] : memref<1x64xf32, #tpu.memory_space<vmem>>, vector<1x64xf32>
    %21 = vector.broadcast %20 : vector<1x64xf32> to vector<128x64xf32>
    %22 = arith.addf %19, %21 : vector<128x64xf32>
    %23 = arith.addf %8, %22 : vector<128x64xf32>
    %cst_17 = arith.constant 0.000000e+00 : f32
    %24 = vector.broadcast %cst_17 : f32 to vector<128x64xf32>
    %25 = arith.maximumf %23, %24 : vector<128x64xf32>
    %26 = arith.truncf %25 : vector<128x64xf32> to vector<128x64xbf16>
    %c0_18 = arith.constant 0 : index
    %c0_19 = arith.constant 0 : index
    %27 = vector.load %arg8[%c0_18, %c0_19] : memref<64x64xbf16, #tpu.memory_space<vmem>>, vector<64x64xbf16>
    %cst_20 = arith.constant dense<0.000000e+00> : vector<128x64xf32>
    %28 = tpu.matmul %26, %27, %cst_20 {dimension_numbers = #tpu.dot_dimension_numbers<[1], [0], [0], [1], [0, 0, 1, 1], [], []>} : vector<128x64xbf16>, vector<64x64xbf16>, vector<128x64xf32> -> vector<128x64xf32>
    %c0_21 = arith.constant 0 : index
    %c0_22 = arith.constant 0 : index
    %29 = vector.load %arg9[%c0_21, %c0_22] : memref<1x64xf32, #tpu.memory_space<vmem>>, vector<1x64xf32>
    %30 = vector.broadcast %29 : vector<1x64xf32> to vector<128x64xf32>
    %31 = arith.addf %28, %30 : vector<128x64xf32>
    %cst_23 = arith.constant 0.000000e+00 : f32
    %32 = vector.broadcast %cst_23 : f32 to vector<128x64xf32>
    %33 = arith.maximumf %31, %32 : vector<128x64xf32>
    %34 = arith.truncf %33 : vector<128x64xf32> to vector<128x64xbf16>
    %c0_24 = arith.constant 0 : index
    %c0_25 = arith.constant 0 : index
    %35 = vector.load %arg10[%c0_24, %c0_25] : memref<64x64xbf16, #tpu.memory_space<vmem>>, vector<64x64xbf16>
    %cst_26 = arith.constant dense<0.000000e+00> : vector<128x64xf32>
    %36 = tpu.matmul %34, %35, %cst_26 {dimension_numbers = #tpu.dot_dimension_numbers<[1], [0], [0], [1], [0, 0, 1, 1], [], []>} : vector<128x64xbf16>, vector<64x64xbf16>, vector<128x64xf32> -> vector<128x64xf32>
    %c0_27 = arith.constant 0 : index
    %c0_28 = arith.constant 0 : index
    %37 = vector.load %arg11[%c0_27, %c0_28] : memref<1x64xf32, #tpu.memory_space<vmem>>, vector<1x64xf32>
    %38 = vector.broadcast %37 : vector<1x64xf32> to vector<128x64xf32>
    %39 = arith.addf %36, %38 : vector<128x64xf32>
    %40 = arith.addf %25, %39 : vector<128x64xf32>
    %cst_29 = arith.constant 0.000000e+00 : f32
    %41 = vector.broadcast %cst_29 : f32 to vector<128x64xf32>
    %42 = arith.maximumf %40, %41 : vector<128x64xf32>
    %43 = arith.truncf %42 : vector<128x64xf32> to vector<128x64xbf16>
    %c0_30 = arith.constant 0 : index
    %c0_31 = arith.constant 0 : index
    %44 = vector.load %arg12[%c0_30, %c0_31] : memref<64x128xbf16, #tpu.memory_space<vmem>>, vector<64x128xbf16>
    %cst_32 = arith.constant dense<0.000000e+00> : vector<128x128xf32>
    %45 = tpu.matmul %43, %44, %cst_32 {dimension_numbers = #tpu.dot_dimension_numbers<[1], [0], [0], [1], [0, 0, 1, 1], [], []>} : vector<128x64xbf16>, vector<64x128xbf16>, vector<128x128xf32> -> vector<128x128xf32>
    %c0_33 = arith.constant 0 : index
    %c0_34 = arith.constant 0 : index
    %46 = vector.load %arg13[%c0_33, %c0_34] : memref<1x128xf32, #tpu.memory_space<vmem>>, vector<1x128xf32>
    %47 = vector.broadcast %46 : vector<1x128xf32> to vector<128x128xf32>
    %48 = arith.addf %45, %47 : vector<128x128xf32>
    %c0_35 = arith.constant 0 : index
    %c0_36 = arith.constant 0 : index
    %49 = vector.load %arg14[%c0_35, %c0_36] : memref<128x128xf32, #tpu.memory_space<vmem>>, vector<128x128xf32>
    tpu.vector_store %arg14[%c0_35, %c0_36], %48 {strides = array<i32>} : memref<128x128xf32, #tpu.memory_space<vmem>>, vector<128x128xf32>,
    return
  }
  func.func @transform_0(%arg0: i32) -> (i32, i32) {
    %c0_i32 = arith.constant 0 : i32
    %c0_i32_0 = arith.constant 0 : i32
    return %arg0, %c0_i32 : i32, i32
  }
  func.func @transform_1(%arg0: i32) -> (i32, i32) {
    %c0_i32 = arith.constant 0 : i32
    %c0_i32_0 = arith.constant 0 : i32
    %c0_i32_1 = arith.constant 0 : i32
    return %c0_i32, %c0_i32_0 : i32, i32
  }
  func.func @transform_2(%arg0: i32) -> (i32, i32) {
    %c0_i32 = arith.constant 0 : i32
    %c0_i32_0 = arith.constant 0 : i32
    %c0_i32_1 = arith.constant 0 : i32
    return %c0_i32, %c0_i32_0 : i32, i32
  }
  func.func @transform_3(%arg0: i32) -> (i32, i32) {
    %c0_i32 = arith.constant 0 : i32
    %c0_i32_0 = arith.constant 0 : i32
    %c0_i32_1 = arith.constant 0 : i32
    return %c0_i32, %c0_i32_0 : i32, i32
  }
  func.func @transform_4(%arg0: i32) -> (i32, i32) {
    %c0_i32 = arith.constant 0 : i32
    %c0_i32_0 = arith.constant 0 : i32
    %c0_i32_1 = arith.constant 0 : i32
    return %c0_i32, %c0_i32_0 : i32, i32
  }
  func.func @transform_5(%arg0: i32) -> (i32, i32) {
    %c0_i32 = arith.constant 0 : i32
    %c0_i32_0 = arith.constant 0 : i32
    %c0_i32_1 = arith.constant 0 : i32
    return %c0_i32, %c0_i32_0 : i32, i32
  }
  func.func @transform_6(%arg0: i32) -> (i32, i32) {
    %c0_i32 = arith.constant 0 : i32
    %c0_i32_0 = arith.constant 0 : i32
    %c0_i32_1 = arith.constant 0 : i32
    return %c0_i32, %c0_i32_0 : i32, i32
  }
  func.func @transform_7(%arg0: i32) -> (i32, i32) {
    %c0_i32 = arith.constant 0 : i32
    %c0_i32_0 = arith.constant 0 : i32
    %c0_i32_1 = arith.constant 0 : i32
    return %c0_i32, %c0_i32_0 : i32, i32
  }
  func.func @transform_8(%arg0: i32) -> (i32, i32) {
    %c0_i32 = arith.constant 0 : i32
    %c0_i32_0 = arith.constant 0 : i32
    %c0_i32_1 = arith.constant 0 : i32
    return %c0_i32, %c0_i32_0 : i32, i32
  }
  func.func @transform_9(%arg0: i32) -> (i32, i32) {
    %c0_i32 = arith.constant 0 : i32
    %c0_i32_0 = arith.constant 0 : i32
    %c0_i32_1 = arith.constant 0 : i32
    return %c0_i32, %c0_i32_0 : i32, i32
  }
  func.func @transform_10(%arg0: i32) -> (i32, i32) {
    %c0_i32 = arith.constant 0 : i32
    %c0_i32_0 = arith.constant 0 : i32
    %c0_i32_1 = arith.constant 0 : i32
    return %c0_i32, %c0_i32_0 : i32, i32
  }
  func.func @transform_11(%arg0: i32) -> (i32, i32) {
    %c0_i32 = arith.constant 0 : i32
    %c0_i32_0 = arith.constant 0 : i32
    %c0_i32_1 = arith.constant 0 : i32
    return %c0_i32, %c0_i32_0 : i32, i32
  }
  func.func @transform_12(%arg0: i32) -> (i32, i32) {
    %c0_i32 = arith.constant 0 : i32
    %c0_i32_0 = arith.constant 0 : i32
    %c0_i32_1 = arith.constant 0 : i32
    return %c0_i32, %c0_i32_0 : i32, i32
  }
  func.func @transform_13(%arg0: i32) -> (i32, i32) {
    %c0_i32 = arith.constant 0 : i32
    %c0_i32_0 = arith.constant 0 : i32
    return %arg0, %c0_i32 : i32, i32
  }
}

</mosaic_0001>

<bundles_post_ra>
// kernel: encode_all.7
= control target key start
LH: loop header
LB: loop body
LE: loop exit
PB: predicated region body
PF: predicated region fallthrough
CT: control target
= control target key end

     0   :  { %s661_s1 = inlined_call_operand.vmem [shape: bf16[256,128], index: 1, kind: input, shape index: {}]   ;;  %s662_s0 = inlined_call_operand.vmem [shape: f32[128,256], index: 0, kind: input, shape index: {}]   ;;  %s663_s2 = inlined_call_operand.vmem [shape: f32[1,128], index: 2, kind: input, shape index: {}]   ;;  %s664_s3 = inlined_call_operand.vmem [shape: f32[128,128], index: 3, kind: output, shape index: {}]  }
   0x1   :  { %v412_v0 = vld [vmem:[%s661_s1 + $0x40] sm:$0xff]   ;;  %v414_v2 = vld [vmem:[%s661_s1 + $0x48] sm:$0xff]   ;;  %v416_v4 = vld [vmem:[%s661_s1 + $0x50] sm:$0xff]  }
   0x2   :  { %v413_v1 = vld [vmem:[%s661_s1] sm:$0xff]   ;;  %332 = vmatprep.subr.bf16.mxu0 %v412_v0  ;;  %396 = vmatprep.subr.bf16.mxu1 %v412_v0  ;;  %v415_v3 = vld [vmem:[%s661_s1 + $0x8] sm:$0xff]   ;;  %v417_v5 = vld [vmem:[%s661_s1 + $0x10] sm:$0xff]  }
   0x3   :  { %333 = vmatpush3.bf16.msra.mxu0 %v413_v1  ;;  %404 = vmatpush3.bf16.msra.mxu1 %v413_v1  ;;  %v418_v6 = vld [vmem:[%s661_s1 + $0x58] sm:$0xff]   ;;  %v420_v8 = vld [vmem:[%s661_s1 + $0x60] sm:$0xff]   ;;  %v422_v10 = vld [vmem:[%s661_s1 + $0x68] sm:$0xff]  }
   0x4   :  { %334 = vmatprep.subr.bf16.mxu0 %v414_v2  ;;  %397 = vmatprep.subr.bf16.mxu1 %v414_v2  ;;  %v419_v7 = vld [vmem:[%s661_s1 + $0x18] sm:$0xff]   ;;  %v421_v9 = vld [vmem:[%s661_s1 + $0x20] sm:$0xff]   ;;  %v16_v11 = vld [vmem:[%s662_s0 + $0x8] sm:$0xff] }
   0x5   :  { %v18_v12 = vld [vmem:[%s662_s0 + $0x18] sm:$0xff]  ;;  %v32_v13 = vld [vmem:[%s662_s0 + $0x88] sm:$0xff]  ;;  %v424_v18 = vld [vmem:[%s661_s1 + $0x70] sm:$0xff]  }
   0x6   :  { %v48_v14 = vpack.c.bf16 %v18_v12, %v16_v11  ;;  %v34_v15 = vld [vmem:[%s662_s0 + $0x98] sm:$0xff]  ;;  %v423_v17 = vld [vmem:[%s661_s1 + $0x28] sm:$0xff]   ;;  %v425_v19 = vld [vmem:[%s661_s1 + $0x30] sm:$0xff]  }
   0x7   :  { %335 = vmatpush3.bf16.msra.mxu0 %v415_v3  ;;  %405 = vmatpush3.bf16.msra.mxu1 %v415_v3  ;;  %v56_v16 = vpack.c.bf16 %v34_v15, %v32_v13  ;;  %v426_v20 = vld [vmem:[%s661_s1 + $0x78] sm:$0xff]   ;;  %v15_v22 = vld [vmem:[%s662_s0] sm:$0xff]  ;;  %v17_v23 = vld [vmem:[%s662_s0 + $0x10] sm:$0xff] }
   0x8   :  { %336 = vmatprep.subr.bf16.mxu0 %v416_v4  ;;  %398 = vmatprep.subr.bf16.mxu1 %v416_v4  ;;  %v427_v21 = vld [vmem:[%s661_s1 + $0x38] sm:$0xff]   ;;  %v31_v24 = vld [vmem:[%s662_s0 + $0x80] sm:$0xff]  ;;  %v33_v25 = vld [vmem:[%s662_s0 + $0x90] sm:$0xff]  ;;  %v47_v30 = vpack.c.bf16 %v17_v23, %v15_v22 }
   0x9   :  { %230 = vmatprep.mubr.bf16.mxu0 %v48_v14  ;;  %262 = vmatprep.mubr.bf16.mxu1 %v56_v16  ;;  %v20_v26 = vld [vmem:[%s662_s0 + $0x28] sm:$0xff]  ;;  %v22_v27 = vld [vmem:[%s662_s0 + $0x38] sm:$0xff]  ;;  %v55_v31 = vpack.c.bf16 %v33_v25, %v31_v24  ;;  %v19_v34 = vld [vmem:[%s662_s0 + $0x20] sm:$0xff] }
   0xa   :  { %v36_v28 = vld [vmem:[%s662_s0 + $0xa8] sm:$0xff]  ;;  %v38_v29 = vld [vmem:[%s662_s0 + $0xb8] sm:$0xff]  ;;  %v50_v32 = vpack.c.bf16 %v22_v27, %v20_v26  ;;  %v21_v35 = vld [vmem:[%s662_s0 + $0x30] sm:$0xff] }
   0xb   :  { %337 = vmatpush3.bf16.msra.mxu0 %v417_v5  ;;  %406 = vmatpush3.bf16.msra.mxu1 %v417_v5  ;;  %v58_v33 = vpack.c.bf16 %v38_v29, %v36_v28  ;;  %v35_v36 = vld [vmem:[%s662_s0 + $0xa0] sm:$0xff]  ;;  %v37_v37 = vld [vmem:[%s662_s0 + $0xb0] sm:$0xff]  ;;  %v24_v38 = vld [vmem:[%s662_s0 + $0x48] sm:$0xff]  ;;  %v49_v42 = vpack.c.bf16 %v21_v35, %v19_v34 }
   0xc   :  { %338 = vmatprep.subr.bf16.mxu0 %v418_v6  ;;  %399 = vmatprep.subr.bf16.mxu1 %v418_v6  ;;  %v26_v39 = vld [vmem:[%s662_s0 + $0x58] sm:$0xff]  ;;  %v40_v40 = vld [vmem:[%s662_s0 + $0xc8] sm:$0xff]  ;;  %v57_v43 = vpack.c.bf16 %v37_v37, %v35_v36  ;;  %v23_v46 = vld [vmem:[%s662_s0 + $0x40] sm:$0xff] }
   0xd   :  { %v42_v41 = vld [vmem:[%s662_s0 + $0xd8] sm:$0xff]  ;;  %v52_v44 = vpack.c.bf16 %v26_v39, %v24_v38  ;;  %v25_v47 = vld [vmem:[%s662_s0 + $0x50] sm:$0xff]  ;;  %v39_v48 = vld [vmem:[%s662_s0 + $0xc0] sm:$0xff] }
   0xe   :  { %v60_v45 = vpack.c.bf16 %v42_v41, %v40_v40  ;;  %v41_v49 = vld [vmem:[%s662_s0 + $0xd0] sm:$0xff]  ;;  %v28_v50 = vld [vmem:[%s662_s0 + $0x68] sm:$0xff]  ;;  %v30_v51 = vld [vmem:[%s662_s0 + $0x78] sm:$0xff]  ;;  %v51_v54 = vpack.c.bf16 %v25_v47, %v23_v46 }
   0xf   :  { %339 = vmatpush3.bf16.msra.mxu0 %v419_v7  ;;  %407 = vmatpush3.bf16.msra.mxu1 %v419_v7  ;;  %v44_v52 = vld [vmem:[%s662_s0 + $0xe8] sm:$0xff]  ;;  %v46_v53 = vld [vmem:[%s662_s0 + $0xf8] sm:$0xff]  ;;  %v59_v55 = vpack.c.bf16 %v41_v49, %v39_v48  ;;  %v54_v56 = vpack.c.bf16 %v30_v51, %v28_v50  ;;  %v27_v58 = vld [vmem:[%s662_s0 + $0x60] sm:$0xff] }
  0x10   :  { %340 = vmatprep.subr.bf16.mxu0 %v420_v8  ;;  %400 = vmatprep.subr.bf16.mxu1 %v420_v8  ;;  %v62_v57 = vpack.c.bf16 %v46_v53, %v44_v52  ;;  %v29_v59 = vld [vmem:[%s662_s0 + $0x70] sm:$0xff]  ;;  %v43_v60 = vld [vmem:[%s662_s0 + $0xe0] sm:$0xff] }
  0x11   :  { %v45_v61 = vld [vmem:[%s662_s0 + $0xf0] sm:$0xff]  ;;  %v53_v62 = vpack.c.bf16 %v29_v59, %v27_v58  ;;  %v595_v2 = vld [vmem:[%s663_s2] ss:$0 sm:$0xff] }
  0x12   :  { %v61_v63 = vpack.c.bf16 %v45_v61, %v43_v60 }
  0x13   :  { %341 = vmatpush3.bf16.msra.mxu0 %v421_v9  ;;  %408 = vmatpush3.bf16.msra.mxu1 %v421_v9 }
  0x14   :  { %342 = vmatprep.subr.bf16.mxu0 %v422_v10  ;;  %401 = vmatprep.subr.bf16.mxu1 %v422_v10 }
  0x17   :  { %343 = vmatpush3.bf16.msra.mxu0 %v423_v17  ;;  %409 = vmatpush3.bf16.msra.mxu1 %v423_v17 }
  0x18   :  { %344 = vmatprep.subr.bf16.mxu0 %v424_v18  ;;  %402 = vmatprep.subr.bf16.mxu1 %v424_v18 }
  0x1b   :  { %345 = vmatpush3.bf16.msra.mxu0 %v425_v19  ;;  %410 = vmatpush3.bf16.msra.mxu1 %v425_v19 }
  0x1c   :  { %346 = vmatprep.subr.bf16.mxu0 %v426_v20  ;;  %403 = vmatprep.subr.bf16.mxu1 %v426_v20 }
  0x1f   :  { %347 = vmatpush3.bf16.msra.mxu0 %v427_v21  ;;  %411 = vmatpush3.bf16.msra.mxu1 %v427_v21 }
  0x22   :  { %231 = vmatmul.mubr.bf16.vlgmr.msra.gmra.mrb[0].mxu0 %v47_v30  ;;  %263 = vmatmul.mubr.bf16.vlgmr.msra.gmra.mrb[0].mxu1 %v55_v31 }
  0x23   :  { %238 = vmatprep.mubr.bf16.mxu0 %v50_v32  ;;  %270 = vmatprep.mubr.bf16.mxu1 %v58_v33 }
  0x2a   :  { %239 = vmatmul.mubr.bf16.gmra.mrb[4].mxu0 %v49_v42  ;;  %271 = vmatmul.mubr.bf16.gmra.mrb[4].mxu1 %v57_v43 }
  0x2b   :  { %246 = vmatprep.mubr.bf16.mxu0 %v52_v44  ;;  %278 = vmatprep.mubr.bf16.mxu1 %v60_v45 }
  0x32   :  { %247 = vmatmul.mubr.bf16.gmra.mrb[8].mxu0 %v51_v54  ;;  %279 = vmatmul.mubr.bf16.gmra.mrb[8].mxu1 %v59_v55 }
  0x33   :  { %254 = vmatprep.mubr.bf16.mxu0 %v54_v56  ;;  %286 = vmatprep.mubr.bf16.mxu1 %v62_v57 }
  0x3a   :  { %255 = vmatmul.mubr.bf16.gmra.mrb[12].mxu0 %v53_v62  ;;  %287 = vmatmul.mubr.bf16.gmra.mrb[12].mxu1 %v61_v63 }
  0xf5   :  { %v348_v0 = vpop.f32.mrb[0].mxu0  ;;  %v372_v1 = vpop.f32.mrb[0].mxu1 }
  0xf6   :  { %v349_v3 = vpop.f32.mrb[1].mxu0  ;;  %v373_v4 = vpop.f32.mrb[1].mxu1 }
  0xf7   :  { %v350_v5 = vadd.f32 %v349_v3, %v348_v0  ;;  %v374_v6 = vadd.f32 %v373_v4, %v372_v1  ;;  %v351_v7 = vpop.f32.mrb[2].mxu0  ;;  %v375_v8 = vpop.f32.mrb[2].mxu1 }
  0xf8   :  { %v352_v9 = vpop.f32.mrb[3].mxu0  ;;  %v376_v10 = vpop.f32.mrb[3].mxu1 }
  0xf9   :  { %v233_v11 = vadd.f32 %v350_v5, %v595_v2  ;;  %v265_v12 = vadd.f32 %v374_v6, %v595_v2  ;;  %v353_v13 = vadd.f32 %v352_v9, %v351_v7  ;;  %v377_v14 = vadd.f32 %v376_v10, %v375_v8 }
  0xfb   :  { %295 = vst [vmem:[%s664_s3] sm:$0xff] %v233_v11  ;;  %303 = vst [vmem:[%s664_s3 + $0x40] sm:$0xff] %v265_v12  ;;  %v236_v15 = vadd.f32 %v353_v13, %v595_v2  ;;  %v268_v16 = vadd.f32 %v377_v14, %v595_v2 }
  0xfd   :  { %296 = vst [vmem:[%s664_s3 + $0x8] sm:$0xff] %v236_v15  ;;  %304 = vst [vmem:[%s664_s3 + $0x48] sm:$0xff] %v268_v16  ;;  %v354_v17 = vpop.f32.mrb[4].mxu0  ;;  %v378_v18 = vpop.f32.mrb[4].mxu1 }
  0xfe   :  { %v355_v19 = vpop.f32.mrb[5].mxu0  ;;  %v379_v20 = vpop.f32.mrb[5].mxu1 }
  0xff   :  { %v356_v21 = vadd.f32 %v355_v19, %v354_v17  ;;  %v380_v22 = vadd.f32 %v379_v20, %v378_v18  ;;  %v357_v23 = vpop.f32.mrb[6].mxu0  ;;  %v381_v24 = vpop.f32.mrb[6].mxu1 }
 0x100   :  { %v358_v25 = vpop.f32.mrb[7].mxu0  ;;  %v382_v26 = vpop.f32.mrb[7].mxu1 }
 0x101   :  { %v241_v27 = vadd.f32 %v356_v21, %v595_v2  ;;  %v273_v28 = vadd.f32 %v380_v22, %v595_v2  ;;  %v359_v29 = vadd.f32 %v358_v25, %v357_v23  ;;  %v383_v30 = vadd.f32 %v382_v26, %v381_v24 }
 0x103   :  { %297 = vst [vmem:[%s664_s3 + $0x10] sm:$0xff] %v241_v27  ;;  %305 = vst [vmem:[%s664_s3 + $0x50] sm:$0xff] %v273_v28  ;;  %v244_v31 = vadd.f32 %v359_v29, %v595_v2  ;;  %v276_v32 = vadd.f32 %v383_v30, %v595_v2 }
 0x105   :  { %298 = vst [vmem:[%s664_s3 + $0x18] sm:$0xff] %v244_v31  ;;  %306 = vst [vmem:[%s664_s3 + $0x58] sm:$0xff] %v276_v32  ;;  %v360_v33 = vpop.f32.mrb[8].mxu0  ;;  %v384_v34 = vpop.f32.mrb[8].mxu1 }
 0x106   :  { %v361_v35 = vpop.f32.mrb[9].mxu0  ;;  %v385_v36 = vpop.f32.mrb[9].mxu1 }
 0x107   :  { %v362_v37 = vadd.f32 %v361_v35, %v360_v33  ;;  %v386_v38 = vadd.f32 %v385_v36, %v384_v34  ;;  %v363_v39 = vpop.f32.mrb[10].mxu0  ;;  %v387_v40 = vpop.f32.mrb[10].mxu1 }
 0x108   :  { %v364_v41 = vpop.f32.mrb[11].mxu0  ;;  %v388_v42 = vpop.f32.mrb[11].mxu1 }
 0x109   :  { %v249_v43 = vadd.f32 %v362_v37, %v595_v2  ;;  %v281_v44 = vadd.f32 %v386_v38, %v595_v2  ;;  %v365_v45 = vadd.f32 %v364_v41, %v363_v39  ;;  %v389_v46 = vadd.f32 %v388_v42, %v387_v40 }
 0x10b   :  { %299 = vst [vmem:[%s664_s3 + $0x20] sm:$0xff] %v249_v43  ;;  %307 = vst [vmem:[%s664_s3 + $0x60] sm:$0xff] %v281_v44  ;;  %v252_v47 = vadd.f32 %v365_v45, %v595_v2  ;;  %v284_v48 = vadd.f32 %v389_v46, %v595_v2 }
 0x10d   :  { %300 = vst [vmem:[%s664_s3 + $0x28] sm:$0xff] %v252_v47  ;;  %308 = vst [vmem:[%s664_s3 + $0x68] sm:$0xff] %v284_v48  ;;  %v366_v49 = vpop.f32.mrb[12].mxu0  ;;  %v390_v50 = vpop.f32.mrb[12].mxu1 }
 0x10e   :  { %v367_v51 = vpop.f32.mrb[13].mxu0  ;;  %v391_v52 = vpop.f32.mrb[13].mxu1 }
 0x10f   :  { %v368_v53 = vadd.f32 %v367_v51, %v366_v49  ;;  %v392_v54 = vadd.f32 %v391_v52, %v390_v50  ;;  %v369_v55 = vpop.f32.mrb[14].mxu0  ;;  %v393_v56 = vpop.f32.mrb[14].mxu1 }
 0x110   :  { %v370_v57 = vpop.f32.mrb[15].mxu0  ;;  %v394_v58 = vpop.f32.mrb[15].mxu1 }
 0x111   :  { %v257_v59 = vadd.f32 %v368_v53, %v595_v2  ;;  %v289_v60 = vadd.f32 %v392_v54, %v595_v2  ;;  %v371_v61 = vadd.f32 %v370_v57, %v369_v55  ;;  %v395_v62 = vadd.f32 %v394_v58, %v393_v56 }
 0x113   :  { %301 = vst [vmem:[%s664_s3 + $0x30] sm:$0xff] %v257_v59  ;;  %309 = vst [vmem:[%s664_s3 + $0x70] sm:$0xff] %v289_v60  ;;  %v260_v63 = vadd.f32 %v371_v61, %v595_v2  ;;  %v292_v0 = vadd.f32 %v395_v62, %v595_v2 }
 0x115   :  { %302 = vst [vmem:[%s664_s3 + $0x38] sm:$0xff] %v260_v63  ;;  %310 = vst [vmem:[%s664_s3 + $0x78] sm:$0xff] %v292_v0 }

// kernel: encode_all.6
= control target key start
LH: loop header
LB: loop body
LE: loop exit
PB: predicated region body
PF: predicated region fallthrough
CT: control target
= control target key end

     0   :  { %vm102_vm0 = vcmask 1040384   ;;  %vm103_vm1 = vcmask 1041408   ;;  %v1481_v1 = vmov 65535   ;;  %vm77_vm2 = vcmask 23552   ;;  %s2037_s1 = inlined_call_operand.vmem [shape: bf16[3,64], index: 1, kind: input, shape index: {}]   ;;  %s2038_s0 = inlined_call_operand.vmem [shape: f32[128,3], index: 0, kind: input, shape index: {}]   ;;  %s2039_s3 = inlined_call_operand.vmem [shape: bf16[64,64], index: 3, kind: input, shape index: {}]   ;;  %s2040_s5 = inlined_call_operand.vmem [shape: bf16[64,64], index: 5, kind: input, shape index: {}]   ;;  %s2041_s2 = inlined_call_operand.vmem [shape: f32[1,64], index: 2, kind: input, shape index: {}]   ;;  %s2042_s7 = inlined_call_operand.vmem [shape: bf16[64,64], index: 7, kind: input, shape index: {}]   ;;  %s2043_s4 = inlined_call_operand.vmem [shape: f32[1,64], index: 4, kind: input, shape index: {}]   ;;  %s2044_s9 = inlined_call_operand.vmem [shape: bf16[64,64], index: 9, kind: input, shape index: {}]   ;;  %s2045_s6 = inlined_call_operand.vmem [shape: f32[1,64], index: 6, kind: input, shape index: {}]   ;;  %s2046_s11 = inlined_call_operand.vmem [shape: bf16[64,128], index: 11, kind: input, shape index: {}]   ;;  %s2047_s8 = inlined_call_operand.vmem [shape: f32[1,64], index: 8, kind: input, shape index: {}]   ;;  %s2048_s10 = inlined_call_operand.vmem [shape: f32[1,64], index: 10, kind: input, shape index: {}]   ;;  %s2049_s12 = inlined_call_operand.vmem [shape: f32[1,128], index: 12, kind: input, shape index: {}]   ;;  %s2050_s13 = inlined_call_operand.vmem [shape: f32[128,128], index: 13, kind: output, shape index: {}]  }
   0x1   :  { %v69_v0 = vld [vmem:[%s2037_s1] sm:$0x3]  ;;  %v104_v2 = vsel %vm102_vm0, 4294967295, %v1481_v1  ;;  %v46_v4 = vld [vmem:[%s2038_s0 + $0x8] sm:$0xff]  ;;  %v47_v7 = vld [vmem:[%s2038_s0 + $0x10] sm:$0xff]  ;;  %vm269_vm3 = vcmask 523264  }
   0x2   :  { %v45_v3 = vld [vmem:[%s2038_s0] sm:$0xff]  ;;  %v105_v5 = vsel %vm103_vm1, %v104_v2, 0  ;;  %v48_v8 = vld [vmem:[%s2038_s0 + $0x18] sm:$0xff]  ;;  %v50_v11 = vld [vmem:[%s2038_s0 + $0x28] sm:$0xff] }
   0x3   :  { %v61_v6 = vpack.c.bf16 %v46_v4, %v45_v3  ;;  %v107_v9 = vand.u32 %v105_v5, %v69_v0  ;;  %v49_v10 = vld [vmem:[%s2038_s0 + $0x20] sm:$0xff]  ;;  %v62_v12 = vpack.c.bf16 %v48_v8, %v47_v7  ;;  %v1462_v15 = vld [vmem:[%s2039_s3 + $0x8] sm:$0xff]   ;;  %v51_v16 = vld [vmem:[%s2038_s0 + $0x30] sm:$0xff] }
   0x4   :  { %v63_v13 = vpack.c.bf16 %v50_v11, %v49_v10  ;;  %v1461_v14 = vld [vmem:[%s2039_s3] sm:$0xff]   ;;  %v52_v17 = vld [vmem:[%s2038_s0 + $0x38] sm:$0xff]  ;;  %v54_v19 = vld [vmem:[%s2038_s0 + $0x48] sm:$0xff] }
   0x5   :  { %1324 = vmatprep.mubr.msk.bf16.mxu0 %vm77_vm2, %v61_v6  ;;  %1322 = vmatprep.subr.bf16.mxu0 %v107_v9  ;;  %v53_v18 = vld [vmem:[%s2038_s0 + $0x40] sm:$0xff]  ;;  %v64_v20 = vpack.c.bf16 %v52_v17, %v51_v16  ;;  %v55_v22 = vld [vmem:[%s2038_s0 + $0x50] sm:$0xff]  ;;  %v56_v23 = vld [vmem:[%s2038_s0 + $0x58] sm:$0xff] }
   0x6   :  { %1323 = vmatpush3.bf16.msra.mxu0 %v107_v9  ;;  %1340 = vmatprep.subr.bf16.mxu1 %v1461_v14  ;;  %v65_v21 = vpack.c.bf16 %v54_v19, %v53_v18  ;;  %v57_v24 = vld [vmem:[%s2038_s0 + $0x60] sm:$0xff]  ;;  %v58_v25 = vld [vmem:[%s2038_s0 + $0x68] sm:$0xff]  ;;  %v66_v26 = vpack.c.bf16 %v56_v23, %v55_v22  ;;  %v59_v28 = vld [vmem:[%s2038_s0 + $0x70] sm:$0xff] }
   0x7   :  { %1341 = vmatpush3.bf16.msra.mxu1 %v1461_v14  ;;  %v67_v27 = vpack.c.bf16 %v58_v25, %v57_v24  ;;  %v60_v29 = vld [vmem:[%s2038_s0 + $0x78] sm:$0xff]  ;;  %v1463_v31 = vld [vmem:[%s2039_s3 + $0x10] sm:$0xff]   ;;  %v1465_v33 = vld [vmem:[%s2040_s5] sm:$0xff]  }
   0x8   :  { %1342 = vmatprep.subr.bf16.mxu1 %v1462_v15  ;;  %v68_v30 = vpack.c.bf16 %v60_v29, %v59_v28  ;;  %v1464_v32 = vld [vmem:[%s2039_s3 + $0x18] sm:$0xff]   ;;  %v1466_v34 = vld [vmem:[%s2040_s5 + $0x8] sm:$0xff]   ;;  %1364 = vmatprep.subr.bf16.mxu0 %v1465_v33  ;;  %v1467_v35 = vld [vmem:[%s2040_s5 + $0x10] sm:$0xff]  }
   0x9   :  { %1325 = vmatmul.mubr.msk.bf16.vlgmr.msra.gmra.mrb[0].mxu0 %vm77_vm2, %v62_v12  ;;  %v1179_v36 = vld [vmem:[%s2041_s2] ss:$0 sm:$0xff]  ;;  %v1468_v29 = vld [vmem:[%s2040_s5 + $0x18] sm:$0xff]  }
   0xa   :  { %1328 = vmatprep.mubr.msk.bf16.mxu0 %vm77_vm2, %v63_v13  ;;  %1365 = vmatpush3.bf16.msra.mxu0 %v1465_v33  ;;  %v1188_v33 = vld [vmem:[%s2043_s4] ss:$0 sm:$0xff] }
   0xb   :  { %1343 = vmatpush3.bf16.msra.mxu1 %v1462_v15  ;;  %1366 = vmatprep.subr.bf16.mxu0 %v1466_v34 }
   0xc   :  { %1344 = vmatprep.subr.bf16.mxu1 %v1463_v31 }
   0xe   :  { %1367 = vmatpush3.bf16.msra.mxu0 %v1466_v34 }
   0xf   :  { %1345 = vmatpush3.bf16.msra.mxu1 %v1463_v31  ;;  %1368 = vmatprep.subr.bf16.mxu0 %v1467_v35  ;;  %v1470_v31 = vld [vmem:[%s2042_s7 + $0x8] sm:$0xff]  }
  0x10   :  { %1346 = vmatprep.subr.bf16.mxu1 %v1464_v32 }
  0x11   :  { %1329 = vmatmul.mubr.msk.bf16.gmra.mrb[4].mxu0 %vm77_vm2, %v64_v20 }
  0x12   :  { %1332 = vmatprep.mubr.msk.bf16.mxu0 %vm77_vm2, %v65_v21  ;;  %1369 = vmatpush3.bf16.msra.mxu0 %v1467_v35 }
  0x13   :  { %1347 = vmatpush3.bf16.msra.mxu1 %v1464_v32  ;;  %1370 = vmatprep.subr.bf16.mxu0 %v1468_v29  ;;  %v1471_v32 = vld [vmem:[%s2042_s7 + $0x10] sm:$0xff]  }
  0x16   :  { %1371 = vmatpush3.bf16.msra.mxu0 %v1468_v29 }
  0x19   :  { %1333 = vmatmul.mubr.msk.bf16.gmra.mrb[8].mxu0 %vm77_vm2, %v66_v26 }
  0x1a   :  { %1336 = vmatprep.mubr.msk.bf16.mxu0 %vm77_vm2, %v67_v27 }
  0x21   :  { %1337 = vmatmul.mubr.msk.bf16.gmra.mrb[12].mxu0 %vm77_vm2, %v68_v30  ;;  %v1469_v30 = vld [vmem:[%s2042_s7] sm:$0xff]  }
  0x22   :  { %1388 = vmatprep.subr.bf16.mxu1 %v1469_v30 }
  0xdc   :  { %v1326_v37 = vpop.f32.mrb[0].mxu0 }
  0xdd   :  { %v143_v38 = vpop.f32.mrb[1].mxu0  ;;  %v1637_v41 = vadd.f32 %v1326_v37, %v1179_v36 }
  0xde   :  { %v1635_v39 = vadd.f32 %v1179_v36, %v143_v38  ;;  %v1327_v40 = vpop.f32.mrb[2].mxu0 }
  0xdf   :  { %v1639_v42 = vadd.f32 %v1327_v40, %v1179_v36  ;;  %v146_v43 = vpop.f32.mrb[3].mxu0  ;;  %v208_v48 = vmax.f32 %v1637_v41, 0.0 }
  0xe0   :  { %v1641_v44 = vadd.f32 %v1179_v36, %v146_v43  ;;  %v206_v46 = vmax.f32 %v1635_v39, 0.0 }
  0xe1   :  { %v209_v45 = vmax.f32 %v1639_v42, 0.0 }
  0xe2   :  { %v207_v47 = vmax.f32 %v1641_v44, 0.0 }
  0xe3   :  { %v223_v51 = vpack.c.bf16 %v209_v45, %v208_v48 }
  0xe4   :  { %v1330_v49 = vpop.f32.mrb[4].mxu0  ;;  %v222_v50 = vpack.c.bf16 %v207_v47, %v206_v46 }
  0xe5   :  { %v159_v52 = vpop.f32.mrb[5].mxu0  ;;  %v1658_v55 = vadd.f32 %v1330_v49, %v1179_v36 }
  0xe6   :  { %v1655_v53 = vadd.f32 %v1179_v36, %v159_v52  ;;  %v1331_v54 = vpop.f32.mrb[6].mxu0  ;;  %1348 = vmatprep.mubr.msk.bf16.mxu1 %vm269_vm3, %v222_v50 }
  0xe7   :  { %v1660_v56 = vadd.f32 %v1331_v54, %v1179_v36  ;;  %v162_v57 = vpop.f32.mrb[7].mxu0  ;;  %1349 = vmatmul.mubr.msk.bf16.vlgmr.msra.gmra.mrb[0].mxu1 %vm269_vm3, %v223_v51  ;;  %v212_v62 = vmax.f32 %v1658_v55, 0.0 }
  0xe8   :  { %v1663_v58 = vadd.f32 %v1179_v36, %v162_v57  ;;  %v210_v60 = vmax.f32 %v1655_v53, 0.0  ;;  %1389 = vmatpush3.bf16.msra.mxu1 %v1469_v30 }
  0xe9   :  { %v213_v59 = vmax.f32 %v1660_v56, 0.0  ;;  %1390 = vmatprep.subr.bf16.mxu1 %v1470_v31 }
  0xea   :  { %v211_v61 = vmax.f32 %v1663_v58, 0.0 }
  0xeb   :  { %v225_v1 = vpack.c.bf16 %v213_v59, %v212_v62 }
  0xec   :  { %v224_v63 = vpack.c.bf16 %v211_v61, %v210_v60  ;;  %v1334_v0 = vpop.f32.mrb[8].mxu0  ;;  %1391 = vmatpush3.bf16.msra.mxu1 %v1470_v31 }
  0xed   :  { %v175_v2 = vpop.f32.mrb[9].mxu0  ;;  %v1680_v5 = vadd.f32 %v1334_v0, %v1179_v36  ;;  %1392 = vmatprep.subr.bf16.mxu1 %v1471_v32 }
  0xee   :  { %v1677_v3 = vadd.f32 %v1179_v36, %v175_v2  ;;  %v1335_v4 = vpop.f32.mrb[10].mxu0  ;;  %1352 = vmatprep.mubr.msk.bf16.mxu1 %vm269_vm3, %v224_v63 }
  0xef   :  { %v1682_v6 = vadd.f32 %v1335_v4, %v1179_v36  ;;  %v178_v7 = vpop.f32.mrb[11].mxu0  ;;  %1353 = vmatmul.mubr.msk.bf16.gmra.mrb[4].mxu1 %vm269_vm3, %v225_v1  ;;  %v216_v12 = vmax.f32 %v1680_v5, 0.0 }
  0xf0   :  { %v1685_v8 = vadd.f32 %v1179_v36, %v178_v7  ;;  %v214_v10 = vmax.f32 %v1677_v3, 0.0  ;;  %1393 = vmatpush3.bf16.msra.mxu1 %v1471_v32 }
  0xf1   :  { %v217_v9 = vmax.f32 %v1682_v6, 0.0 }
  0xf2   :  { %v215_v11 = vmax.f32 %v1685_v8, 0.0 }
  0xf3   :  { %v227_v15 = vpack.c.bf16 %v217_v9, %v216_v12 }
  0xf4   :  { %v226_v13 = vpack.c.bf16 %v215_v11, %v214_v10  ;;  %v1338_v14 = vpop.f32.mrb[12].mxu0 }
  0xf5   :  { %v191_v16 = vpop.f32.mrb[13].mxu0  ;;  %v1702_v19 = vadd.f32 %v1338_v14, %v1179_v36 }
  0xf6   :  { %v1699_v17 = vadd.f32 %v1179_v36, %v191_v16  ;;  %v1339_v18 = vpop.f32.mrb[14].mxu0  ;;  %1356 = vmatprep.mubr.msk.bf16.mxu1 %vm269_vm3, %v226_v13 }
  0xf7   :  { %v1704_v20 = vadd.f32 %v1339_v18, %v1179_v36  ;;  %v194_v21 = vpop.f32.mrb[15].mxu0  ;;  %1357 = vmatmul.mubr.msk.bf16.gmra.mrb[8].mxu1 %vm269_vm3, %v227_v15  ;;  %v220_v26 = vmax.f32 %v1702_v19, 0.0 }
  0xf8   :  { %v1707_v22 = vadd.f32 %v1179_v36, %v194_v21  ;;  %v218_v24 = vmax.f32 %v1699_v17, 0.0 }
  0xf9   :  { %v221_v23 = vmax.f32 %v1704_v20, 0.0 }
  0xfa   :  { %v219_v25 = vmax.f32 %v1707_v22, 0.0 }
  0xfb   :  { %v229_v28 = vpack.c.bf16 %v221_v23, %v220_v26 }
  0xfc   :  { %v228_v27 = vpack.c.bf16 %v219_v25, %v218_v24 }
  0xfe   :  { %1360 = vmatprep.mubr.msk.bf16.mxu1 %vm269_vm3, %v228_v27 }
  0xff   :  { %1361 = vmatmul.mubr.msk.bf16.gmra.mrb[12].mxu1 %vm269_vm3, %v229_v28 }
 0x1ba   :  { %v1350_v34 = vpop.f32.mrb[0].mxu1 }
 0x1bb   :  { %v337_v35 = vadd.f32 %v1350_v34, %v1188_v33  ;;  %v328_v36 = vpop.f32.mrb[1].mxu1 }
 0x1bc   :  { %v329_v37 = vadd.f32 %v1188_v33, %v328_v36  ;;  %v1351_v38 = vpop.f32.mrb[2].mxu1 }
 0x1bd   :  { %v340_v40 = vadd.f32 %v1351_v38, %v1188_v33  ;;  %v331_v43 = vpop.f32.mrb[3].mxu1  ;;  %v393_v50 = vmax.f32 %v337_v35, 0.0 }
 0x1be   :  { %v332_v49 = vadd.f32 %v1188_v33, %v331_v43  ;;  %v391_v52 = vmax.f32 %v329_v37, 0.0 }
 0x1bf   :  { %v394_v51 = vmax.f32 %v340_v40, 0.0 }
 0x1c0   :  { %v392_v54 = vmax.f32 %v332_v49, 0.0 }
 0x1c1   :  { %v408_v57 = vpack.c.bf16 %v394_v51, %v393_v50 }
 0x1c2   :  { %v407_v63 = vpack.c.bf16 %v392_v54, %v391_v52  ;;  %v1354_v0 = vpop.f32.mrb[4].mxu1 }
 0x1c3   :  { %v353_v1 = vadd.f32 %v1354_v0, %v1188_v33  ;;  %v344_v2 = vpop.f32.mrb[5].mxu1 }
 0x1c4   :  { %v345_v4 = vadd.f32 %v1188_v33, %v344_v2  ;;  %v1355_v7 = vpop.f32.mrb[6].mxu1  ;;  %1372 = vmatprep.mubr.msk.bf16.mxu0 %vm269_vm3, %v407_v63 }
 0x1c5   :  { %v356_v13 = vadd.f32 %v1355_v7, %v1188_v33  ;;  %v347_v14 = vpop.f32.mrb[7].mxu1  ;;  %1373 = vmatmul.mubr.msk.bf16.vlgmr.msra.gmra.mrb[16].mxu0 %vm269_vm3, %v408_v57  ;;  %v397_v16 = vmax.f32 %v353_v1, 0.0 }
 0x1c6   :  { %v348_v15 = vadd.f32 %v1188_v33, %v347_v14  ;;  %v395_v21 = vmax.f32 %v345_v4, 0.0 }
 0x1c7   :  { %v398_v18 = vmax.f32 %v356_v13, 0.0 }
 0x1c8   :  { %v396_v27 = vmax.f32 %v348_v15, 0.0 }
 0x1c9   :  { %v410_v28 = vpack.c.bf16 %v398_v18, %v397_v16 }
 0x1ca   :  { %v409_v29 = vpack.c.bf16 %v396_v27, %v395_v21  ;;  %v1358_v30 = vpop.f32.mrb[8].mxu1  ;;  %v1472_v27 = vld [vmem:[%s2042_s7 + $0x18] sm:$0xff]  }
 0x1cb   :  { %v369_v31 = vadd.f32 %v1358_v30, %v1188_v33  ;;  %v360_v32 = vpop.f32.mrb[9].mxu1  ;;  %1394 = vmatprep.subr.bf16.mxu1 %v1472_v27  ;;  %v1761_v30 = vld [vmem:[%s2045_s6] ss:$0 sm:$0xff] }
 0x1cc   :  { %v361_v34 = vadd.f32 %v1188_v33, %v360_v32  ;;  %v1359_v35 = vpop.f32.mrb[10].mxu1  ;;  %1376 = vmatprep.mubr.msk.bf16.mxu0 %vm269_vm3, %v409_v29  ;;  %1395 = vmatpush3.bf16.msra.mxu1 %v1472_v27  ;;  %v1475_v29 = vld [vmem:[%s2044_s9 + $0x10] sm:$0xff]  }
 0x1cd   :  { %v372_v36 = vadd.f32 %v1359_v35, %v1188_v33  ;;  %v363_v37 = vpop.f32.mrb[11].mxu1  ;;  %1377 = vmatmul.mubr.msk.bf16.gmra.mrb[20].mxu0 %vm269_vm3, %v410_v28  ;;  %v401_v40 = vmax.f32 %v369_v31, 0.0  ;;  %v1474_v28 = vld [vmem:[%s2044_s9 + $0x8] sm:$0xff]  }
 0x1ce   :  { %v364_v38 = vadd.f32 %v1188_v33, %v363_v37  ;;  %v399_v49 = vmax.f32 %v361_v34, 0.0 }
 0x1cf   :  { %v402_v43 = vmax.f32 %v372_v36, 0.0 }
 0x1d0   :  { %v400_v50 = vmax.f32 %v364_v38, 0.0 }
 0x1d1   :  { %v412_v51 = vpack.c.bf16 %v402_v43, %v401_v40 }
 0x1d2   :  { %v411_v52 = vpack.c.bf16 %v400_v50, %v399_v49  ;;  %v1362_v54 = vpop.f32.mrb[12].mxu1 }
 0x1d3   :  { %v385_v57 = vadd.f32 %v1362_v54, %v1188_v33  ;;  %v376_v63 = vpop.f32.mrb[13].mxu1 }
 0x1d4   :  { %v377_v0 = vadd.f32 %v1188_v33, %v376_v63  ;;  %v1363_v1 = vpop.f32.mrb[14].mxu1  ;;  %1380 = vmatprep.mubr.msk.bf16.mxu0 %vm269_vm3, %v411_v52 }
 0x1d5   :  { %v388_v2 = vadd.f32 %v1363_v1, %v1188_v33  ;;  %v379_v4 = vpop.f32.mrb[15].mxu1  ;;  %1381 = vmatmul.mubr.msk.bf16.gmra.mrb[24].mxu0 %vm269_vm3, %v412_v51  ;;  %v405_v13 = vmax.f32 %v385_v57, 0.0 }
 0x1d6   :  { %v380_v7 = vadd.f32 %v1188_v33, %v379_v4  ;;  %v403_v15 = vmax.f32 %v377_v0, 0.0  ;;  %v1473_v33 = vld [vmem:[%s2044_s9] sm:$0xff]  }
 0x1d7   :  { %v406_v14 = vmax.f32 %v388_v2, 0.0  ;;  %1412 = vmatprep.subr.bf16.mxu0 %v1473_v33 }
 0x1d8   :  { %v404_v16 = vmax.f32 %v380_v7, 0.0  ;;  %1413 = vmatpush3.bf16.msra.mxu0 %v1473_v33 }
 0x1d9   :  { %v414_v18 = vpack.c.bf16 %v406_v14, %v405_v13  ;;  %1414 = vmatprep.subr.bf16.mxu0 %v1474_v28 }
 0x1da   :  { %v413_v21 = vpack.c.bf16 %v404_v16, %v403_v15 }
 0x1dc   :  { %1384 = vmatprep.mubr.msk.bf16.mxu0 %vm269_vm3, %v413_v21  ;;  %1415 = vmatpush3.bf16.msra.mxu0 %v1474_v28 }
 0x1dd   :  { %1385 = vmatmul.mubr.msk.bf16.gmra.mrb[28].mxu0 %vm269_vm3, %v414_v18  ;;  %1416 = vmatprep.subr.bf16.mxu0 %v1475_v29 }
 0x1e0   :  { %1417 = vmatpush3.bf16.msra.mxu0 %v1475_v29 }
 0x298   :  { %v1374_v31 = vpop.f32.mrb[16].mxu0 }
 0x299   :  { %v521_v32 = vadd.f32 %v1374_v31, %v1761_v30  ;;  %v512_v34 = vpop.f32.mrb[17].mxu0 }
 0x29a   :  { %v513_v35 = vadd.f32 %v1761_v30, %v512_v34  ;;  %v1375_v36 = vpop.f32.mrb[18].mxu0 }
 0x29b   :  { %v524_v37 = vadd.f32 %v1375_v36, %v1761_v30  ;;  %v515_v38 = vpop.f32.mrb[19].mxu0  ;;  %v1773_v49 = vadd.f32 %v521_v32, %v208_v48 }
 0x29c   :  { %v1768_v40 = vadd.f32 %v513_v35, %v206_v46  ;;  %v516_v43 = vadd.f32 %v1761_v30, %v515_v38 }
 0x29d   :  { %v1777_v50 = vadd.f32 %v524_v37, %v209_v45  ;;  %v593_v57 = vmax.f32 %v1773_v49, 0.0 }
 0x29e   :  { %v1781_v51 = vadd.f32 %v516_v43, %v207_v47  ;;  %v591_v39 = vmax.f32 %v1768_v40, 0.0 }
 0x29f   :  { %v594_v52 = vmax.f32 %v1777_v50, 0.0 }
 0x2a0   :  { %v592_v46 = vmax.f32 %v1781_v51, 0.0  ;;  %v1378_v54 = vpop.f32.mrb[20].mxu0 }
 0x2a1   :  { %v537_v41 = vadd.f32 %v1378_v54, %v1761_v30  ;;  %v528_v48 = vpop.f32.mrb[21].mxu0  ;;  %v608_v47 = vpack.c.bf16 %v594_v52, %v593_v57 }
 0x2a2   :  { %v607_v42 = vpack.c.bf16 %v592_v46, %v591_v39  ;;  %v529_v44 = vadd.f32 %v1761_v30, %v528_v48  ;;  %v1379_v45 = vpop.f32.mrb[22].mxu0 }
 0x2a3   :  { %v540_v63 = vadd.f32 %v1379_v45, %v1761_v30  ;;  %v531_v0 = vpop.f32.mrb[23].mxu0  ;;  %v1806_v4 = vadd.f32 %v537_v41, %v212_v62 }
 0x2a4   :  { %v1800_v1 = vadd.f32 %v529_v44, %v210_v60  ;;  %v532_v2 = vadd.f32 %v1761_v30, %v531_v0  ;;  %1396 = vmatprep.mubr.msk.bf16.mxu1 %vm269_vm3, %v607_v42  ;;  %v1479_v42 = vld [vmem:[%s2046_s11 + $0x10] sm:$0xff]   ;;  %v1214_v44 = vld [vmem:[%s2047_s8] ss:$0 sm:$0xff] }
 0x2a5   :  { %v1810_v7 = vadd.f32 %v540_v63, %v213_v59  ;;  %1397 = vmatmul.mubr.msk.bf16.vlgmr.msra.gmra.mrb[16].mxu1 %vm269_vm3, %v608_v47  ;;  %v597_v55 = vmax.f32 %v1806_v4, 0.0 }
 0x2a6   :  { %v1815_v13 = vadd.f32 %v532_v2, %v211_v61  ;;  %v595_v60 = vmax.f32 %v1800_v1, 0.0 }
 0x2a7   :  { %v598_v53 = vmax.f32 %v1810_v7, 0.0 }
 0x2a8   :  { %v596_v14 = vmax.f32 %v1815_v13, 0.0  ;;  %v1382_v15 = vpop.f32.mrb[24].mxu0 }
 0x2a9   :  { %v553_v62 = vadd.f32 %v1382_v15, %v1761_v30  ;;  %v544_v56 = vpop.f32.mrb[25].mxu0  ;;  %v610_v16 = vpack.c.bf16 %v598_v53, %v597_v55 }
 0x2aa   :  { %v609_v59 = vpack.c.bf16 %v596_v14, %v595_v60  ;;  %v545_v58 = vadd.f32 %v1761_v30, %v544_v56  ;;  %v1383_v61 = vpop.f32.mrb[26].mxu0 }
 0x2ab   :  { %v556_v18 = vadd.f32 %v1383_v61, %v1761_v30  ;;  %v547_v21 = vpop.f32.mrb[27].mxu0  ;;  %v1840_v28 = vadd.f32 %v553_v62, %v216_v12 }
 0x2ac   :  { %v1834_v27 = vadd.f32 %v545_v58, %v214_v10  ;;  %v548_v33 = vadd.f32 %v1761_v30, %v547_v21  ;;  %1400 = vmatprep.mubr.msk.bf16.mxu1 %vm269_vm3, %v609_v59 }
 0x2ad   :  { %v1844_v29 = vadd.f32 %v556_v18, %v217_v9  ;;  %1401 = vmatmul.mubr.msk.bf16.gmra.mrb[20].mxu1 %vm269_vm3, %v610_v16  ;;  %v601_v5 = vmax.f32 %v1840_v28, 0.0 }
 0x2ae   :  { %v1849_v31 = vadd.f32 %v548_v33, %v215_v11  ;;  %v599_v10 = vmax.f32 %v1834_v27, 0.0 }
 0x2af   :  { %v602_v3 = vmax.f32 %v1844_v29, 0.0 }
 0x2b0   :  { %v600_v32 = vmax.f32 %v1849_v31, 0.0  ;;  %v1386_v34 = vpop.f32.mrb[28].mxu0 }
 0x2b1   :  { %v569_v12 = vadd.f32 %v1386_v34, %v1761_v30  ;;  %v560_v6 = vpop.f32.mrb[29].mxu0  ;;  %v612_v35 = vpack.c.bf16 %v602_v3, %v601_v5 }
 0x2b2   :  { %v611_v9 = vpack.c.bf16 %v600_v32, %v599_v10  ;;  %v561_v8 = vadd.f32 %v1761_v30, %v560_v6  ;;  %v1387_v11 = vpop.f32.mrb[30].mxu0 }
 0x2b3   :  { %v572_v36 = vadd.f32 %v1387_v11, %v1761_v30  ;;  %v563_v37 = vpop.f32.mrb[31].mxu0  ;;  %v1874_v54 = vadd.f32 %v569_v12, %v220_v26  ;;  %v1478_v26 = vld [vmem:[%s2046_s11 + $0x8] sm:$0xff]  }
 0x2b4   :  { %v1868_v38 = vadd.f32 %v561_v8, %v218_v24  ;;  %v564_v43 = vadd.f32 %v1761_v30, %v563_v37  ;;  %1404 = vmatprep.mubr.msk.bf16.mxu1 %vm269_vm3, %v611_v9 }
 0x2b5   :  { %v1878_v41 = vadd.f32 %v572_v36, %v221_v23  ;;  %1405 = vmatmul.mubr.msk.bf16.gmra.mrb[24].mxu1 %vm269_vm3, %v612_v35  ;;  %v605_v19 = vmax.f32 %v1874_v54, 0.0  ;;  %v1476_v23 = vld [vmem:[%s2044_s9 + $0x18] sm:$0xff]  }
 0x2b6   :  { %v1883_v48 = vadd.f32 %v564_v43, %v219_v25  ;;  %v603_v24 = vmax.f32 %v1868_v38, 0.0  ;;  %1418 = vmatprep.subr.bf16.mxu0 %v1476_v23  ;;  %v1477_v25 = vld [vmem:[%s2046_s11] sm:$0xff]  }
 0x2b7   :  { %v606_v17 = vmax.f32 %v1878_v41, 0.0  ;;  %1419 = vmatpush3.bf16.msra.mxu0 %v1476_v23  ;;  %1436 = vmatprep.subr.bf16.mxu1 %v1477_v25  ;;  %v1240_v38 = vld [vmem:[%s2049_s12] ss:$0 sm:$0xff] }
 0x2b8   :  { %v604_v30 = vmax.f32 %v1883_v48, 0.0  ;;  %1437 = vmatpush3.bf16.msra.mxu1 %v1477_v25 }
 0x2b9   :  { %v614_v22 = vpack.c.bf16 %v606_v17, %v605_v19  ;;  %1438 = vmatprep.subr.bf16.mxu1 %v1478_v26 }
 0x2ba   :  { %v613_v20 = vpack.c.bf16 %v604_v30, %v603_v24 }
 0x2bc   :  { %1408 = vmatprep.mubr.msk.bf16.mxu1 %vm269_vm3, %v613_v20  ;;  %1439 = vmatpush3.bf16.msra.mxu1 %v1478_v26 }
 0x2bd   :  { %1409 = vmatmul.mubr.msk.bf16.gmra.mrb[28].mxu1 %vm269_vm3, %v614_v22  ;;  %1440 = vmatprep.subr.bf16.mxu1 %v1479_v42 }
 0x2c0   :  { %1441 = vmatpush3.bf16.msra.mxu1 %v1479_v42 }
 0x378   :  { %v1398_v45 = vpop.f32.mrb[16].mxu1 }
 0x379   :  { %v721_v47 = vadd.f32 %v1398_v45, %v1214_v44  ;;  %v712_v63 = vpop.f32.mrb[17].mxu1 }
 0x37a   :  { %v713_v0 = vadd.f32 %v1214_v44, %v712_v63  ;;  %v1399_v2 = vpop.f32.mrb[18].mxu1 }
 0x37b   :  { %v724_v15 = vadd.f32 %v1399_v2, %v1214_v44  ;;  %v715_v62 = vpop.f32.mrb[19].mxu1  ;;  %v777_v59 = vmax.f32 %v721_v47, 0.0 }
 0x37c   :  { %v716_v56 = vadd.f32 %v1214_v44, %v715_v62  ;;  %v775_v61 = vmax.f32 %v713_v0, 0.0 }
 0x37d   :  { %v778_v58 = vmax.f32 %v724_v15, 0.0 }
 0x37e   :  { %v776_v16 = vmax.f32 %v716_v56, 0.0 }
 0x37f   :  { %v792_v18 = vpack.c.bf16 %v778_v58, %v777_v59 }
 0x380   :  { %v791_v21 = vpack.c.bf16 %v776_v16, %v775_v61  ;;  %v1402_v33 = vpop.f32.mrb[20].mxu1 }
 0x381   :  { %v737_v34 = vadd.f32 %v1402_v33, %v1214_v44  ;;  %v728_v12 = vpop.f32.mrb[21].mxu1 }
 0x382   :  { %v729_v6 = vadd.f32 %v1214_v44, %v728_v12  ;;  %v1403_v9 = vpop.f32.mrb[22].mxu1  ;;  %1420 = vmatprep.mubr.msk.bf16.mxu0 %vm269_vm3, %v791_v21 }
 0x383   :  { %v740_v8 = vadd.f32 %v1403_v9, %v1214_v44  ;;  %v731_v11 = vpop.f32.mrb[23].mxu1  ;;  %1421 = vmatmul.mubr.msk.bf16.vlgmr.msra.gmra.mrb[32].mxu0 %vm269_vm3, %v792_v18  ;;  %v781_v36 = vmax.f32 %v737_v34, 0.0 }
 0x384   :  { %v732_v35 = vadd.f32 %v1214_v44, %v731_v11  ;;  %v779_v43 = vmax.f32 %v729_v6, 0.0 }
 0x385   :  { %v782_v37 = vmax.f32 %v740_v8, 0.0 }
 0x386   :  { %v780_v20 = vmax.f32 %v732_v35, 0.0 }
 0x387   :  { %v794_v22 = vpack.c.bf16 %v782_v37, %v781_v36 }
 0x388   :  { %v793_v23 = vpack.c.bf16 %v780_v20, %v779_v43  ;;  %v1406_v25 = vpop.f32.mrb[24].mxu1  ;;  %v1480_v20 = vld [vmem:[%s2046_s11 + $0x18] sm:$0xff]  }
 0x389   :  { %v753_v26 = vadd.f32 %v1406_v25, %v1214_v44  ;;  %v744_v42 = vpop.f32.mrb[25].mxu1  ;;  %1442 = vmatprep.subr.bf16.mxu1 %v1480_v20 }
 0x38a   :  { %v745_v45 = vadd.f32 %v1214_v44, %v744_v42  ;;  %v1407_v47 = vpop.f32.mrb[26].mxu1  ;;  %1424 = vmatprep.mubr.msk.bf16.mxu0 %vm269_vm3, %v793_v23  ;;  %1443 = vmatpush3.bf16.msra.mxu1 %v1480_v20 }
 0x38b   :  { %v756_v63 = vadd.f32 %v1407_v47, %v1214_v44  ;;  %v747_v0 = vpop.f32.mrb[27].mxu1  ;;  %1425 = vmatmul.mubr.msk.bf16.gmra.mrb[36].mxu0 %vm269_vm3, %v794_v22  ;;  %v785_v15 = vmax.f32 %v753_v26, 0.0 }
 0x38c   :  { %v748_v2 = vadd.f32 %v1214_v44, %v747_v0  ;;  %v783_v56 = vmax.f32 %v745_v45, 0.0 }
 0x38d   :  { %v786_v62 = vmax.f32 %v756_v63, 0.0 }
 0x38e   :  { %v784_v59 = vmax.f32 %v748_v2, 0.0 }
 0x38f   :  { %v796_v58 = vpack.c.bf16 %v786_v62, %v785_v15 }
 0x390   :  { %v795_v61 = vpack.c.bf16 %v784_v59, %v783_v56  ;;  %v1410_v16 = vpop.f32.mrb[28].mxu1 }
 0x391   :  { %v769_v18 = vadd.f32 %v1410_v16, %v1214_v44  ;;  %v760_v21 = vpop.f32.mrb[29].mxu1 }
 0x392   :  { %v761_v33 = vadd.f32 %v1214_v44, %v760_v21  ;;  %v1411_v34 = vpop.f32.mrb[30].mxu1  ;;  %1428 = vmatprep.mubr.msk.bf16.mxu0 %vm269_vm3, %v795_v61 }
 0x393   :  { %v772_v12 = vadd.f32 %v1411_v34, %v1214_v44  ;;  %v763_v6 = vpop.f32.mrb[31].mxu1  ;;  %1429 = vmatmul.mubr.msk.bf16.gmra.mrb[40].mxu0 %vm269_vm3, %v796_v58  ;;  %v789_v8 = vmax.f32 %v769_v18, 0.0 }
 0x394   :  { %v764_v9 = vadd.f32 %v1214_v44, %v763_v6  ;;  %v787_v35 = vmax.f32 %v761_v33, 0.0  ;;  %v1928_v44 = vld [vmem:[%s2048_s10] ss:$0 sm:$0xff] }
 0x395   :  { %v790_v11 = vmax.f32 %v772_v12, 0.0 }
 0x396   :  { %v788_v36 = vmax.f32 %v764_v9, 0.0 }
 0x397   :  { %v798_v37 = vpack.c.bf16 %v790_v11, %v789_v8 }
 0x398   :  { %v797_v43 = vpack.c.bf16 %v788_v36, %v787_v35 }
 0x39a   :  { %1432 = vmatprep.mubr.msk.bf16.mxu0 %vm269_vm3, %v797_v43 }
 0x39b   :  { %1433 = vmatmul.mubr.msk.bf16.gmra.mrb[44].mxu0 %vm269_vm3, %v798_v37 }
 0x456   :  { %v1422_v22 = vpop.f32.mrb[32].mxu0 }
 0x457   :  { %v905_v23 = vadd.f32 %v1422_v22, %v1928_v44  ;;  %v896_v25 = vpop.f32.mrb[33].mxu0 }
 0x458   :  { %v897_v26 = vadd.f32 %v1928_v44, %v896_v25  ;;  %v1423_v42 = vpop.f32.mrb[34].mxu0 }
 0x459   :  { %v961_v45 = vadd.f32 %v905_v23, %v593_v57  ;;  %v908_v47 = vadd.f32 %v1423_v42, %v1928_v44  ;;  %v899_v63 = vpop.f32.mrb[35].mxu0 }
 0x45a   :  { %v959_v0 = vadd.f32 %v897_v26, %v591_v39  ;;  %v900_v2 = vadd.f32 %v1928_v44, %v899_v63 }
 0x45b   :  { %v962_v15 = vadd.f32 %v908_v47, %v594_v52  ;;  %v977_v56 = vmax.f32 %v961_v45, 0.0 }
 0x45c   :  { %v960_v62 = vadd.f32 %v900_v2, %v592_v46  ;;  %v975_v58 = vmax.f32 %v959_v0, 0.0 }
 0x45d   :  { %v978_v59 = vmax.f32 %v962_v15, 0.0 }
 0x45e   :  { %v976_v61 = vmax.f32 %v960_v62, 0.0  ;;  %v1426_v49 = vpop.f32.mrb[36].mxu0 }
 0x45f   :  { %v992_v57 = vpack.c.bf16 %v978_v59, %v977_v56  ;;  %v921_v16 = vadd.f32 %v1426_v49, %v1928_v44  ;;  %v912_v18 = vpop.f32.mrb[37].mxu0 }
 0x460   :  { %v991_v21 = vpack.c.bf16 %v976_v61, %v975_v58  ;;  %v913_v40 = vadd.f32 %v1928_v44, %v912_v18  ;;  %v1427_v39 = vpop.f32.mrb[38].mxu0 }
 0x461   :  { %v965_v50 = vadd.f32 %v921_v16, %v597_v55  ;;  %v924_v52 = vadd.f32 %v1427_v39, %v1928_v44  ;;  %v915_v51 = vpop.f32.mrb[39].mxu0 }
 0x462   :  { %v963_v46 = vadd.f32 %v913_v40, %v595_v60  ;;  %v916_v33 = vadd.f32 %v1928_v44, %v915_v51  ;;  %1444 = vmatprep.mubr.msk.bf16.mxu1 %vm269_vm3, %v991_v21 }
 0x463   :  { %v966_v34 = vadd.f32 %v924_v52, %v598_v53  ;;  %1445 = vmatmul.mubr.msk.bf16.vlgmr.msra.gmra.mrb[32].mxu1 %vm269_vm3, %v992_v57  ;;  %v981_v4 = vmax.f32 %v965_v50, 0.0 }
 0x464   :  { %v964_v12 = vadd.f32 %v916_v33, %v596_v14  ;;  %v979_v6 = vmax.f32 %v963_v46, 0.0 }
 0x465   :  { %v982_v55 = vmax.f32 %v966_v34, 0.0 }
 0x466   :  { %v980_v9 = vmax.f32 %v964_v12, 0.0  ;;  %v1430_v8 = vpop.f32.mrb[40].mxu0 }
 0x467   :  { %v994_v11 = vpack.c.bf16 %v982_v55, %v981_v4  ;;  %v937_v1 = vadd.f32 %v1430_v8, %v1928_v44  ;;  %v928_v60 = vpop.f32.mrb[41].mxu0 }
 0x468   :  { %v993_v35 = vpack.c.bf16 %v980_v9, %v979_v6  ;;  %v929_v36 = vadd.f32 %v1928_v44, %v928_v60  ;;  %v1431_v37 = vpop.f32.mrb[42].mxu0 }
 0x469   :  { %v969_v7 = vadd.f32 %v937_v1, %v601_v5  ;;  %v940_v53 = vadd.f32 %v1431_v37, %v1928_v44  ;;  %v931_v13 = vpop.f32.mrb[43].mxu0 }
 0x46a   :  { %v967_v14 = vadd.f32 %v929_v36, %v599_v10  ;;  %v932_v43 = vadd.f32 %v1928_v44, %v931_v13  ;;  %1448 = vmatprep.mubr.msk.bf16.mxu1 %vm269_vm3, %v993_v35 }
 0x46b   :  { %v970_v20 = vadd.f32 %v940_v53, %v602_v3  ;;  %1449 = vmatmul.mubr.msk.bf16.gmra.mrb[36].mxu1 %vm269_vm3, %v994_v11  ;;  %v985_v28 = vmax.f32 %v969_v7, 0.0 }
 0x46c   :  { %v968_v22 = vadd.f32 %v932_v43, %v600_v32  ;;  %v983_v23 = vmax.f32 %v967_v14, 0.0 }
 0x46d   :  { %v986_v5 = vmax.f32 %v970_v20, 0.0 }
 0x46e   :  { %v984_v25 = vmax.f32 %v968_v22, 0.0  ;;  %v1434_v26 = vpop.f32.mrb[44].mxu0 }
 0x46f   :  { %v996_v42 = vpack.c.bf16 %v986_v5, %v985_v28  ;;  %v953_v27 = vadd.f32 %v1434_v26, %v1928_v44  ;;  %v944_v10 = vpop.f32.mrb[45].mxu0 }
 0x470   :  { %v995_v45 = vpack.c.bf16 %v984_v25, %v983_v23  ;;  %v945_v47 = vadd.f32 %v1928_v44, %v944_v10  ;;  %v1435_v63 = vpop.f32.mrb[46].mxu0 }
 0x471   :  { %v973_v29 = vadd.f32 %v953_v27, %v605_v19  ;;  %v956_v3 = vadd.f32 %v1435_v63, %v1928_v44  ;;  %v947_v31 = vpop.f32.mrb[47].mxu0 }
 0x472   :  { %v971_v32 = vadd.f32 %v945_v47, %v603_v24  ;;  %v948_v0 = vadd.f32 %v1928_v44, %v947_v31  ;;  %1452 = vmatprep.mubr.msk.bf16.mxu1 %vm269_vm3, %v995_v45 }
 0x473   :  { %v974_v2 = vadd.f32 %v956_v3, %v606_v17  ;;  %1453 = vmatmul.mubr.msk.bf16.gmra.mrb[40].mxu1 %vm269_vm3, %v996_v42  ;;  %v989_v54 = vmax.f32 %v973_v29, 0.0 }
 0x474   :  { %v972_v15 = vadd.f32 %v948_v0, %v604_v30  ;;  %v987_v62 = vmax.f32 %v971_v32, 0.0 }
 0x475   :  { %v990_v19 = vmax.f32 %v974_v2, 0.0 }
 0x476   :  { %v988_v56 = vmax.f32 %v972_v15, 0.0 }
 0x477   :  { %v998_v59 = vpack.c.bf16 %v990_v19, %v989_v54 }
 0x478   :  { %v997_v58 = vpack.c.bf16 %v988_v56, %v987_v62 }
 0x47a   :  { %1456 = vmatprep.mubr.msk.bf16.mxu1 %vm269_vm3, %v997_v58 }
 0x47b   :  { %1457 = vmatmul.mubr.msk.bf16.gmra.mrb[44].mxu1 %vm269_vm3, %v998_v59 }
 0x536   :  { %v1446_v41 = vpop.f32.mrb[32].mxu1 }
 0x537   :  { %v1105_v17 = vadd.f32 %v1446_v41, %v1240_v38  ;;  %v1096_v24 = vpop.f32.mrb[33].mxu1 }
 0x538   :  { %v1097_v44 = vadd.f32 %v1240_v38, %v1096_v24  ;;  %v1447_v48 = vpop.f32.mrb[34].mxu1 }
 0x539   :  { %1161 = vst [vmem:[%s2050_s13 + $0x10] sm:$0xff] %v1105_v17  ;;  %v1108_v30 = vadd.f32 %v1447_v48, %v1240_v38  ;;  %v1099_v61 = vpop.f32.mrb[35].mxu1 }
 0x53a   :  { %1159 = vst [vmem:[%s2050_s13] sm:$0xff] %v1097_v44  ;;  %v1100_v49 = vadd.f32 %v1240_v38, %v1099_v61 }
 0x53b   :  { %1162 = vst [vmem:[%s2050_s13 + $0x18] sm:$0xff] %v1108_v30 }
 0x53c   :  { %1160 = vst [vmem:[%s2050_s13 + $0x8] sm:$0xff] %v1100_v49 }
 0x53e   :  { %v1450_v57 = vpop.f32.mrb[36].mxu1 }
 0x53f   :  { %v1121_v16 = vadd.f32 %v1450_v57, %v1240_v38  ;;  %v1112_v18 = vpop.f32.mrb[37].mxu1 }
 0x540   :  { %v1113_v21 = vadd.f32 %v1240_v38, %v1112_v18  ;;  %v1451_v40 = vpop.f32.mrb[38].mxu1 }
 0x541   :  { %1165 = vst [vmem:[%s2050_s13 + $0x30] sm:$0xff] %v1121_v16  ;;  %v1124_v39 = vadd.f32 %v1451_v40, %v1240_v38  ;;  %v1115_v50 = vpop.f32.mrb[39].mxu1 }
 0x542   :  { %1163 = vst [vmem:[%s2050_s13 + $0x20] sm:$0xff] %v1113_v21  ;;  %v1116_v52 = vadd.f32 %v1240_v38, %v1115_v50 }
 0x543   :  { %1166 = vst [vmem:[%s2050_s13 + $0x38] sm:$0xff] %v1124_v39 }
 0x544   :  { %1164 = vst [vmem:[%s2050_s13 + $0x28] sm:$0xff] %v1116_v52 }
 0x546   :  { %v1454_v51 = vpop.f32.mrb[40].mxu1 }
 0x547   :  { %v1137_v46 = vadd.f32 %v1454_v51, %v1240_v38  ;;  %v1128_v33 = vpop.f32.mrb[41].mxu1 }
 0x548   :  { %v1129_v34 = vadd.f32 %v1240_v38, %v1128_v33  ;;  %v1455_v12 = vpop.f32.mrb[42].mxu1 }
 0x549   :  { %1169 = vst [vmem:[%s2050_s13 + $0x50] sm:$0xff] %v1137_v46  ;;  %v1140_v4 = vadd.f32 %v1455_v12, %v1240_v38  ;;  %v1131_v55 = vpop.f32.mrb[43].mxu1 }
 0x54a   :  { %1167 = vst [vmem:[%s2050_s13 + $0x40] sm:$0xff] %v1129_v34  ;;  %v1132_v6 = vadd.f32 %v1240_v38, %v1131_v55 }
 0x54b   :  { %1170 = vst [vmem:[%s2050_s13 + $0x58] sm:$0xff] %v1140_v4 }
 0x54c   :  { %1168 = vst [vmem:[%s2050_s13 + $0x48] sm:$0xff] %v1132_v6 }
 0x54e   :  { %v1458_v9 = vpop.f32.mrb[44].mxu1 }
 0x54f   :  { %v1153_v8 = vadd.f32 %v1458_v9, %v1240_v38  ;;  %v1144_v11 = vpop.f32.mrb[45].mxu1 }
 0x550   :  { %v1145_v1 = vadd.f32 %v1240_v38, %v1144_v11  ;;  %v1459_v60 = vpop.f32.mrb[46].mxu1 }
 0x551   :  { %1173 = vst [vmem:[%s2050_s13 + $0x70] sm:$0xff] %v1153_v8  ;;  %v1156_v35 = vadd.f32 %v1459_v60, %v1240_v38  ;;  %v1147_v36 = vpop.f32.mrb[47].mxu1 }
 0x552   :  { %1171 = vst [vmem:[%s2050_s13 + $0x60] sm:$0xff] %v1145_v1  ;;  %v1148_v37 = vadd.f32 %v1240_v38, %v1147_v36 }
 0x553   :  { %1174 = vst [vmem:[%s2050_s13 + $0x78] sm:$0xff] %v1156_v35 }
 0x554   :  { %1172 = vst [vmem:[%s2050_s13 + $0x68] sm:$0xff] %v1148_v37 }

// kernel: encode_all.4
= control target key start
LH: loop header
LB: loop body
LE: loop exit
PB: predicated region body
PF: predicated region fallthrough
CT: control target
= control target key end

     0   :  { %vm102_vm0 = vcmask 1040384   ;;  %vm77_vm1 = vcmask 15360   ;;  %vm266_vm2 = vcmask 523264   ;;  %s2033_s1 = inlined_call_operand.vmem [shape: bf16[2,64], index: 1, kind: input, shape index: {}]   ;;  %s2034_s0 = inlined_call_operand.vmem [shape: f32[128,2], index: 0, kind: input, shape index: {}]   ;;  %s2035_s3 = inlined_call_operand.vmem [shape: bf16[64,64], index: 3, kind: input, shape index: {}]   ;;  %s2036_s5 = inlined_call_operand.vmem [shape: bf16[64,64], index: 5, kind: input, shape index: {}]   ;;  %s2037_s2 = inlined_call_operand.vmem [shape: f32[1,64], index: 2, kind: input, shape index: {}]   ;;  %s2038_s7 = inlined_call_operand.vmem [shape: bf16[64,64], index: 7, kind: input, shape index: {}]   ;;  %s2039_s4 = inlined_call_operand.vmem [shape: f32[1,64], index: 4, kind: input, shape index: {}]   ;;  %s2040_s9 = inlined_call_operand.vmem [shape: bf16[64,64], index: 9, kind: input, shape index: {}]   ;;  %s2041_s6 = inlined_call_operand.vmem [shape: f32[1,64], index: 6, kind: input, shape index: {}]   ;;  %s2042_s11 = inlined_call_operand.vmem [shape: bf16[64,128], index: 11, kind: input, shape index: {}]   ;;  %s2043_s8 = inlined_call_operand.vmem [shape: f32[1,64], index: 8, kind: input, shape index: {}]   ;;  %s2044_s10 = inlined_call_operand.vmem [shape: f32[1,64], index: 10, kind: input, shape index: {}]   ;;  %s2045_s12 = inlined_call_operand.vmem [shape: f32[1,128], index: 12, kind: input, shape index: {}]   ;;  %s2046_s13 = inlined_call_operand.vmem [shape: f32[128,128], index: 13, kind: output, shape index: {}]  }
   0x1   :  { %v69_v0 = vld [vmem:[%s2033_s1] sm:$0x1]  ;;  %v46_v2 = vld [vmem:[%s2034_s0 + $0x8] sm:$0xff]  ;;  %v47_v5 = vld [vmem:[%s2034_s0 + $0x10] sm:$0xff] }
   0x2   :  { %v45_v1 = vld [vmem:[%s2034_s0] sm:$0xff]  ;;  %1457 = vmatprep.subr.msk.bf16.mxu0 %vm102_vm0, %v69_v0  ;;  %v104_v3 = vsel %vm102_vm0, %v69_v0, 0  ;;  %v48_v6 = vld [vmem:[%s2034_s0 + $0x18] sm:$0xff]  ;;  %v50_v9 = vld [vmem:[%s2034_s0 + $0x28] sm:$0xff] }
   0x3   :  { %v61_v4 = vpack.c.bf16 %v46_v2, %v45_v1  ;;  %v49_v7 = vld [vmem:[%s2034_s0 + $0x20] sm:$0xff]  ;;  %1320 = vmatpush3.bf16.msra.mxu0 %v104_v3  ;;  %v62_v8 = vpack.c.bf16 %v48_v6, %v47_v5  ;;  %v51_v11 = vld [vmem:[%s2034_s0 + $0x30] sm:$0xff]  ;;  %v52_v12 = vld [vmem:[%s2034_s0 + $0x38] sm:$0xff] }
   0x4   :  { %v63_v10 = vpack.c.bf16 %v50_v9, %v49_v7  ;;  %v53_v13 = vld [vmem:[%s2034_s0 + $0x40] sm:$0xff]  ;;  %v54_v14 = vld [vmem:[%s2034_s0 + $0x48] sm:$0xff]  ;;  %v64_v17 = vpack.c.bf16 %v52_v12, %v51_v11  ;;  %v55_v19 = vld [vmem:[%s2034_s0 + $0x50] sm:$0xff] }
   0x5   :  { %1321 = vmatprep.mubr.msk.bf16.mxu0 %vm77_vm1, %v61_v4  ;;  %v1458_v15 = vld [vmem:[%s2035_s3] sm:$0xff]   ;;  %v1459_v16 = vld [vmem:[%s2035_s3 + $0x8] sm:$0xff]   ;;  %v65_v18 = vpack.c.bf16 %v54_v14, %v53_v13  ;;  %v56_v20 = vld [vmem:[%s2034_s0 + $0x58] sm:$0xff] }
   0x6   :  { %1322 = vmatmul.mubr.msk.bf16.vlgmr.msra.gmra.mrb[0].mxu0 %vm77_vm1, %v62_v8  ;;  %1337 = vmatprep.subr.bf16.mxu1 %v1458_v15  ;;  %v57_v21 = vld [vmem:[%s2034_s0 + $0x60] sm:$0xff]  ;;  %v58_v22 = vld [vmem:[%s2034_s0 + $0x68] sm:$0xff]  ;;  %v66_v23 = vpack.c.bf16 %v56_v20, %v55_v19  ;;  %v59_v25 = vld [vmem:[%s2034_s0 + $0x70] sm:$0xff] }
   0x7   :  { %1325 = vmatprep.mubr.msk.bf16.mxu0 %vm77_vm1, %v63_v10  ;;  %1338 = vmatpush3.bf16.msra.mxu1 %v1458_v15  ;;  %v67_v24 = vpack.c.bf16 %v58_v22, %v57_v21  ;;  %v60_v26 = vld [vmem:[%s2034_s0 + $0x78] sm:$0xff]  ;;  %v1460_v28 = vld [vmem:[%s2035_s3 + $0x10] sm:$0xff]   ;;  %v1462_v30 = vld [vmem:[%s2036_s5] sm:$0xff]  }
   0x8   :  { %1339 = vmatprep.subr.bf16.mxu1 %v1459_v16  ;;  %v68_v27 = vpack.c.bf16 %v60_v26, %v59_v25  ;;  %v1461_v29 = vld [vmem:[%s2035_s3 + $0x18] sm:$0xff]   ;;  %v1463_v31 = vld [vmem:[%s2036_s5 + $0x8] sm:$0xff]   ;;  %1361 = vmatprep.subr.bf16.mxu0 %v1462_v30  ;;  %v1464_v32 = vld [vmem:[%s2036_s5 + $0x10] sm:$0xff]  }
   0x9   :  { %1362 = vmatpush3.bf16.msra.mxu0 %v1462_v30  ;;  %v1176_v33 = vld [vmem:[%s2037_s2] ss:$0 sm:$0xff]  ;;  %v1465_v26 = vld [vmem:[%s2036_s5 + $0x18] sm:$0xff]  }
   0xa   :  { %1363 = vmatprep.subr.bf16.mxu0 %v1463_v31  ;;  %v1185_v30 = vld [vmem:[%s2039_s4] ss:$0 sm:$0xff] }
   0xb   :  { %1340 = vmatpush3.bf16.msra.mxu1 %v1459_v16 }
   0xc   :  { %1341 = vmatprep.subr.bf16.mxu1 %v1460_v28 }
   0xd   :  { %1364 = vmatpush3.bf16.msra.mxu0 %v1463_v31 }
   0xe   :  { %1326 = vmatmul.mubr.msk.bf16.gmra.mrb[4].mxu0 %vm77_vm1, %v64_v17  ;;  %1365 = vmatprep.subr.bf16.mxu0 %v1464_v32 }
   0xf   :  { %1329 = vmatprep.mubr.msk.bf16.mxu0 %vm77_vm1, %v65_v18  ;;  %1342 = vmatpush3.bf16.msra.mxu1 %v1460_v28  ;;  %v1467_v28 = vld [vmem:[%s2038_s7 + $0x8] sm:$0xff]  }
  0x10   :  { %1343 = vmatprep.subr.bf16.mxu1 %v1461_v29 }
  0x11   :  { %1366 = vmatpush3.bf16.msra.mxu0 %v1464_v32 }
  0x12   :  { %1367 = vmatprep.subr.bf16.mxu0 %v1465_v26 }
  0x13   :  { %1344 = vmatpush3.bf16.msra.mxu1 %v1461_v29  ;;  %v1468_v29 = vld [vmem:[%s2038_s7 + $0x10] sm:$0xff]  }
  0x15   :  { %1368 = vmatpush3.bf16.msra.mxu0 %v1465_v26 }
  0x16   :  { %1330 = vmatmul.mubr.msk.bf16.gmra.mrb[8].mxu0 %vm77_vm1, %v66_v23 }
  0x17   :  { %1333 = vmatprep.mubr.msk.bf16.mxu0 %vm77_vm1, %v67_v24 }
  0x1e   :  { %1334 = vmatmul.mubr.msk.bf16.gmra.mrb[12].mxu0 %vm77_vm1, %v68_v27  ;;  %v1466_v27 = vld [vmem:[%s2038_s7] sm:$0xff]  }
  0x1f   :  { %1385 = vmatprep.subr.bf16.mxu1 %v1466_v27 }
  0xd9   :  { %v1323_v34 = vpop.f32.mrb[0].mxu0 }
  0xda   :  { %v140_v35 = vpop.f32.mrb[1].mxu0  ;;  %v1633_v38 = vadd.f32 %v1323_v34, %v1176_v33 }
  0xdb   :  { %v1631_v36 = vadd.f32 %v1176_v33, %v140_v35  ;;  %v1324_v37 = vpop.f32.mrb[2].mxu0 }
  0xdc   :  { %v1635_v39 = vadd.f32 %v1324_v37, %v1176_v33  ;;  %v143_v40 = vpop.f32.mrb[3].mxu0  ;;  %v205_v45 = vmax.f32 %v1633_v38, 0.0 }
  0xdd   :  { %v1637_v41 = vadd.f32 %v1176_v33, %v143_v40  ;;  %v203_v43 = vmax.f32 %v1631_v36, 0.0 }
  0xde   :  { %v206_v42 = vmax.f32 %v1635_v39, 0.0 }
  0xdf   :  { %v204_v44 = vmax.f32 %v1637_v41, 0.0 }
  0xe0   :  { %v220_v48 = vpack.c.bf16 %v206_v42, %v205_v45 }
  0xe1   :  { %v1327_v46 = vpop.f32.mrb[4].mxu0  ;;  %v219_v47 = vpack.c.bf16 %v204_v44, %v203_v43 }
  0xe2   :  { %v156_v49 = vpop.f32.mrb[5].mxu0  ;;  %v1654_v52 = vadd.f32 %v1327_v46, %v1176_v33 }
  0xe3   :  { %v1651_v50 = vadd.f32 %v1176_v33, %v156_v49  ;;  %v1328_v51 = vpop.f32.mrb[6].mxu0  ;;  %1345 = vmatprep.mubr.msk.bf16.mxu1 %vm266_vm2, %v219_v47 }
  0xe4   :  { %v1656_v53 = vadd.f32 %v1328_v51, %v1176_v33  ;;  %v159_v54 = vpop.f32.mrb[7].mxu0  ;;  %1346 = vmatmul.mubr.msk.bf16.vlgmr.msra.gmra.mrb[0].mxu1 %vm266_vm2, %v220_v48  ;;  %v209_v59 = vmax.f32 %v1654_v52, 0.0 }
  0xe5   :  { %v1659_v55 = vadd.f32 %v1176_v33, %v159_v54  ;;  %v207_v57 = vmax.f32 %v1651_v50, 0.0  ;;  %1386 = vmatpush3.bf16.msra.mxu1 %v1466_v27 }
  0xe6   :  { %v210_v56 = vmax.f32 %v1656_v53, 0.0  ;;  %1387 = vmatprep.subr.bf16.mxu1 %v1467_v28 }
  0xe7   :  { %v208_v58 = vmax.f32 %v1659_v55, 0.0 }
  0xe8   :  { %v222_v62 = vpack.c.bf16 %v210_v56, %v209_v59 }
  0xe9   :  { %v221_v60 = vpack.c.bf16 %v208_v58, %v207_v57  ;;  %v1331_v61 = vpop.f32.mrb[8].mxu0  ;;  %1388 = vmatpush3.bf16.msra.mxu1 %v1467_v28 }
  0xea   :  { %v172_v63 = vpop.f32.mrb[9].mxu0  ;;  %v1676_v2 = vadd.f32 %v1331_v61, %v1176_v33  ;;  %1389 = vmatprep.subr.bf16.mxu1 %v1468_v29 }
  0xeb   :  { %v1673_v0 = vadd.f32 %v1176_v33, %v172_v63  ;;  %v1332_v1 = vpop.f32.mrb[10].mxu0  ;;  %1349 = vmatprep.mubr.msk.bf16.mxu1 %vm266_vm2, %v221_v60 }
  0xec   :  { %v1678_v3 = vadd.f32 %v1332_v1, %v1176_v33  ;;  %v175_v4 = vpop.f32.mrb[11].mxu0  ;;  %1350 = vmatmul.mubr.msk.bf16.gmra.mrb[4].mxu1 %vm266_vm2, %v222_v62  ;;  %v213_v9 = vmax.f32 %v1676_v2, 0.0 }
  0xed   :  { %v1681_v5 = vadd.f32 %v1176_v33, %v175_v4  ;;  %v211_v7 = vmax.f32 %v1673_v0, 0.0  ;;  %1390 = vmatpush3.bf16.msra.mxu1 %v1468_v29 }
  0xee   :  { %v214_v6 = vmax.f32 %v1678_v3, 0.0 }
  0xef   :  { %v212_v8 = vmax.f32 %v1681_v5, 0.0 }
  0xf0   :  { %v224_v12 = vpack.c.bf16 %v214_v6, %v213_v9 }
  0xf1   :  { %v223_v10 = vpack.c.bf16 %v212_v8, %v211_v7  ;;  %v1335_v11 = vpop.f32.mrb[12].mxu0 }
  0xf2   :  { %v188_v13 = vpop.f32.mrb[13].mxu0  ;;  %v1698_v16 = vadd.f32 %v1335_v11, %v1176_v33 }
  0xf3   :  { %v1695_v14 = vadd.f32 %v1176_v33, %v188_v13  ;;  %v1336_v15 = vpop.f32.mrb[14].mxu0  ;;  %1353 = vmatprep.mubr.msk.bf16.mxu1 %vm266_vm2, %v223_v10 }
  0xf4   :  { %v1700_v17 = vadd.f32 %v1336_v15, %v1176_v33  ;;  %v191_v18 = vpop.f32.mrb[15].mxu0  ;;  %1354 = vmatmul.mubr.msk.bf16.gmra.mrb[8].mxu1 %vm266_vm2, %v224_v12  ;;  %v217_v23 = vmax.f32 %v1698_v16, 0.0 }
  0xf5   :  { %v1703_v19 = vadd.f32 %v1176_v33, %v191_v18  ;;  %v215_v21 = vmax.f32 %v1695_v14, 0.0 }
  0xf6   :  { %v218_v20 = vmax.f32 %v1700_v17, 0.0 }
  0xf7   :  { %v216_v22 = vmax.f32 %v1703_v19, 0.0 }
  0xf8   :  { %v226_v25 = vpack.c.bf16 %v218_v20, %v217_v23 }
  0xf9   :  { %v225_v24 = vpack.c.bf16 %v216_v22, %v215_v21 }
  0xfb   :  { %1357 = vmatprep.mubr.msk.bf16.mxu1 %vm266_vm2, %v225_v24 }
  0xfc   :  { %1358 = vmatmul.mubr.msk.bf16.gmra.mrb[12].mxu1 %vm266_vm2, %v226_v25 }
 0x1b7   :  { %v1347_v31 = vpop.f32.mrb[0].mxu1 }
 0x1b8   :  { %v334_v32 = vadd.f32 %v1347_v31, %v1185_v30  ;;  %v325_v33 = vpop.f32.mrb[1].mxu1 }
 0x1b9   :  { %v326_v34 = vadd.f32 %v1185_v30, %v325_v33  ;;  %v1348_v35 = vpop.f32.mrb[2].mxu1 }
 0x1ba   :  { %v337_v37 = vadd.f32 %v1348_v35, %v1185_v30  ;;  %v328_v40 = vpop.f32.mrb[3].mxu1  ;;  %v390_v47 = vmax.f32 %v334_v32, 0.0 }
 0x1bb   :  { %v329_v46 = vadd.f32 %v1185_v30, %v328_v40  ;;  %v388_v49 = vmax.f32 %v326_v34, 0.0 }
 0x1bc   :  { %v391_v48 = vmax.f32 %v337_v37, 0.0 }
 0x1bd   :  { %v389_v51 = vmax.f32 %v329_v46, 0.0 }
 0x1be   :  { %v405_v54 = vpack.c.bf16 %v391_v48, %v390_v47 }
 0x1bf   :  { %v404_v60 = vpack.c.bf16 %v389_v51, %v388_v49  ;;  %v1351_v61 = vpop.f32.mrb[4].mxu1 }
 0x1c0   :  { %v350_v62 = vadd.f32 %v1351_v61, %v1185_v30  ;;  %v341_v63 = vpop.f32.mrb[5].mxu1 }
 0x1c1   :  { %v342_v1 = vadd.f32 %v1185_v30, %v341_v63  ;;  %v1352_v4 = vpop.f32.mrb[6].mxu1  ;;  %1369 = vmatprep.mubr.msk.bf16.mxu0 %vm266_vm2, %v404_v60 }
 0x1c2   :  { %v353_v10 = vadd.f32 %v1352_v4, %v1185_v30  ;;  %v344_v11 = vpop.f32.mrb[7].mxu1  ;;  %1370 = vmatmul.mubr.msk.bf16.vlgmr.msra.gmra.mrb[16].mxu0 %vm266_vm2, %v405_v54  ;;  %v394_v13 = vmax.f32 %v350_v62, 0.0 }
 0x1c3   :  { %v345_v12 = vadd.f32 %v1185_v30, %v344_v11  ;;  %v392_v18 = vmax.f32 %v342_v1, 0.0 }
 0x1c4   :  { %v395_v15 = vmax.f32 %v353_v10, 0.0 }
 0x1c5   :  { %v393_v24 = vmax.f32 %v345_v12, 0.0 }
 0x1c6   :  { %v407_v25 = vpack.c.bf16 %v395_v15, %v394_v13 }
 0x1c7   :  { %v406_v26 = vpack.c.bf16 %v393_v24, %v392_v18  ;;  %v1355_v27 = vpop.f32.mrb[8].mxu1  ;;  %v1469_v24 = vld [vmem:[%s2038_s7 + $0x18] sm:$0xff]  }
 0x1c8   :  { %v366_v28 = vadd.f32 %v1355_v27, %v1185_v30  ;;  %v357_v29 = vpop.f32.mrb[9].mxu1  ;;  %1391 = vmatprep.subr.bf16.mxu1 %v1469_v24  ;;  %v1757_v27 = vld [vmem:[%s2041_s6] ss:$0 sm:$0xff] }
 0x1c9   :  { %v358_v31 = vadd.f32 %v1185_v30, %v357_v29  ;;  %v1356_v32 = vpop.f32.mrb[10].mxu1  ;;  %1373 = vmatprep.mubr.msk.bf16.mxu0 %vm266_vm2, %v406_v26  ;;  %1392 = vmatpush3.bf16.msra.mxu1 %v1469_v24  ;;  %v1472_v26 = vld [vmem:[%s2040_s9 + $0x10] sm:$0xff]  }
 0x1ca   :  { %v369_v33 = vadd.f32 %v1356_v32, %v1185_v30  ;;  %v360_v34 = vpop.f32.mrb[11].mxu1  ;;  %1374 = vmatmul.mubr.msk.bf16.gmra.mrb[20].mxu0 %vm266_vm2, %v407_v25  ;;  %v398_v37 = vmax.f32 %v366_v28, 0.0  ;;  %v1471_v25 = vld [vmem:[%s2040_s9 + $0x8] sm:$0xff]  }
 0x1cb   :  { %v361_v35 = vadd.f32 %v1185_v30, %v360_v34  ;;  %v396_v46 = vmax.f32 %v358_v31, 0.0 }
 0x1cc   :  { %v399_v40 = vmax.f32 %v369_v33, 0.0 }
 0x1cd   :  { %v397_v47 = vmax.f32 %v361_v35, 0.0 }
 0x1ce   :  { %v409_v48 = vpack.c.bf16 %v399_v40, %v398_v37 }
 0x1cf   :  { %v408_v49 = vpack.c.bf16 %v397_v47, %v396_v46  ;;  %v1359_v51 = vpop.f32.mrb[12].mxu1 }
 0x1d0   :  { %v382_v54 = vadd.f32 %v1359_v51, %v1185_v30  ;;  %v373_v60 = vpop.f32.mrb[13].mxu1 }
 0x1d1   :  { %v374_v61 = vadd.f32 %v1185_v30, %v373_v60  ;;  %v1360_v62 = vpop.f32.mrb[14].mxu1  ;;  %1377 = vmatprep.mubr.msk.bf16.mxu0 %vm266_vm2, %v408_v49 }
 0x1d2   :  { %v385_v63 = vadd.f32 %v1360_v62, %v1185_v30  ;;  %v376_v1 = vpop.f32.mrb[15].mxu1  ;;  %1378 = vmatmul.mubr.msk.bf16.gmra.mrb[24].mxu0 %vm266_vm2, %v409_v48  ;;  %v402_v10 = vmax.f32 %v382_v54, 0.0 }
 0x1d3   :  { %v377_v4 = vadd.f32 %v1185_v30, %v376_v1  ;;  %v400_v12 = vmax.f32 %v374_v61, 0.0  ;;  %v1470_v30 = vld [vmem:[%s2040_s9] sm:$0xff]  }
 0x1d4   :  { %v403_v11 = vmax.f32 %v385_v63, 0.0  ;;  %1409 = vmatprep.subr.bf16.mxu0 %v1470_v30 }
 0x1d5   :  { %v401_v13 = vmax.f32 %v377_v4, 0.0  ;;  %1410 = vmatpush3.bf16.msra.mxu0 %v1470_v30 }
 0x1d6   :  { %v411_v15 = vpack.c.bf16 %v403_v11, %v402_v10  ;;  %1411 = vmatprep.subr.bf16.mxu0 %v1471_v25 }
 0x1d7   :  { %v410_v18 = vpack.c.bf16 %v401_v13, %v400_v12 }
 0x1d9   :  { %1381 = vmatprep.mubr.msk.bf16.mxu0 %vm266_vm2, %v410_v18  ;;  %1412 = vmatpush3.bf16.msra.mxu0 %v1471_v25 }
 0x1da   :  { %1382 = vmatmul.mubr.msk.bf16.gmra.mrb[28].mxu0 %vm266_vm2, %v411_v15  ;;  %1413 = vmatprep.subr.bf16.mxu0 %v1472_v26 }
 0x1dd   :  { %1414 = vmatpush3.bf16.msra.mxu0 %v1472_v26 }
 0x295   :  { %v1371_v28 = vpop.f32.mrb[16].mxu0 }
 0x296   :  { %v518_v29 = vadd.f32 %v1371_v28, %v1757_v27  ;;  %v509_v31 = vpop.f32.mrb[17].mxu0 }
 0x297   :  { %v510_v32 = vadd.f32 %v1757_v27, %v509_v31  ;;  %v1372_v33 = vpop.f32.mrb[18].mxu0 }
 0x298   :  { %v521_v34 = vadd.f32 %v1372_v33, %v1757_v27  ;;  %v512_v35 = vpop.f32.mrb[19].mxu0  ;;  %v1769_v46 = vadd.f32 %v518_v29, %v205_v45 }
 0x299   :  { %v1764_v37 = vadd.f32 %v510_v32, %v203_v43  ;;  %v513_v40 = vadd.f32 %v1757_v27, %v512_v35 }
 0x29a   :  { %v1773_v47 = vadd.f32 %v521_v34, %v206_v42  ;;  %v590_v54 = vmax.f32 %v1769_v46, 0.0 }
 0x29b   :  { %v1777_v48 = vadd.f32 %v513_v40, %v204_v44  ;;  %v588_v36 = vmax.f32 %v1764_v37, 0.0 }
 0x29c   :  { %v591_v49 = vmax.f32 %v1773_v47, 0.0 }
 0x29d   :  { %v589_v43 = vmax.f32 %v1777_v48, 0.0  ;;  %v1375_v51 = vpop.f32.mrb[20].mxu0 }
 0x29e   :  { %v534_v38 = vadd.f32 %v1375_v51, %v1757_v27  ;;  %v525_v45 = vpop.f32.mrb[21].mxu0  ;;  %v605_v44 = vpack.c.bf16 %v591_v49, %v590_v54 }
 0x29f   :  { %v604_v39 = vpack.c.bf16 %v589_v43, %v588_v36  ;;  %v526_v41 = vadd.f32 %v1757_v27, %v525_v45  ;;  %v1376_v42 = vpop.f32.mrb[22].mxu0 }
 0x2a0   :  { %v537_v60 = vadd.f32 %v1376_v42, %v1757_v27  ;;  %v528_v61 = vpop.f32.mrb[23].mxu0  ;;  %v1802_v1 = vadd.f32 %v534_v38, %v209_v59 }
 0x2a1   :  { %v1796_v62 = vadd.f32 %v526_v41, %v207_v57  ;;  %v529_v63 = vadd.f32 %v1757_v27, %v528_v61  ;;  %1393 = vmatprep.mubr.msk.bf16.mxu1 %vm266_vm2, %v604_v39  ;;  %v1476_v39 = vld [vmem:[%s2042_s11 + $0x10] sm:$0xff]   ;;  %v1211_v41 = vld [vmem:[%s2043_s8] ss:$0 sm:$0xff] }
 0x2a2   :  { %v1806_v4 = vadd.f32 %v537_v60, %v210_v56  ;;  %1394 = vmatmul.mubr.msk.bf16.vlgmr.msra.gmra.mrb[16].mxu1 %vm266_vm2, %v605_v44  ;;  %v594_v52 = vmax.f32 %v1802_v1, 0.0 }
 0x2a3   :  { %v1811_v10 = vadd.f32 %v529_v63, %v208_v58  ;;  %v592_v57 = vmax.f32 %v1796_v62, 0.0 }
 0x2a4   :  { %v595_v50 = vmax.f32 %v1806_v4, 0.0 }
 0x2a5   :  { %v593_v11 = vmax.f32 %v1811_v10, 0.0  ;;  %v1379_v12 = vpop.f32.mrb[24].mxu0 }
 0x2a6   :  { %v550_v59 = vadd.f32 %v1379_v12, %v1757_v27  ;;  %v541_v53 = vpop.f32.mrb[25].mxu0  ;;  %v607_v13 = vpack.c.bf16 %v595_v50, %v594_v52 }
 0x2a7   :  { %v606_v56 = vpack.c.bf16 %v593_v11, %v592_v57  ;;  %v542_v55 = vadd.f32 %v1757_v27, %v541_v53  ;;  %v1380_v58 = vpop.f32.mrb[26].mxu0 }
 0x2a8   :  { %v553_v15 = vadd.f32 %v1380_v58, %v1757_v27  ;;  %v544_v18 = vpop.f32.mrb[27].mxu0  ;;  %v1836_v25 = vadd.f32 %v550_v59, %v213_v9 }
 0x2a9   :  { %v1830_v24 = vadd.f32 %v542_v55, %v211_v7  ;;  %v545_v30 = vadd.f32 %v1757_v27, %v544_v18  ;;  %1397 = vmatprep.mubr.msk.bf16.mxu1 %vm266_vm2, %v606_v56 }
 0x2aa   :  { %v1840_v26 = vadd.f32 %v553_v15, %v214_v6  ;;  %1398 = vmatmul.mubr.msk.bf16.gmra.mrb[20].mxu1 %vm266_vm2, %v607_v13  ;;  %v598_v2 = vmax.f32 %v1836_v25, 0.0 }
 0x2ab   :  { %v1845_v28 = vadd.f32 %v545_v30, %v212_v8  ;;  %v596_v7 = vmax.f32 %v1830_v24, 0.0 }
 0x2ac   :  { %v599_v0 = vmax.f32 %v1840_v26, 0.0 }
 0x2ad   :  { %v597_v29 = vmax.f32 %v1845_v28, 0.0  ;;  %v1383_v31 = vpop.f32.mrb[28].mxu0 }
 0x2ae   :  { %v566_v9 = vadd.f32 %v1383_v31, %v1757_v27  ;;  %v557_v3 = vpop.f32.mrb[29].mxu0  ;;  %v609_v32 = vpack.c.bf16 %v599_v0, %v598_v2 }
 0x2af   :  { %v608_v6 = vpack.c.bf16 %v597_v29, %v596_v7  ;;  %v558_v5 = vadd.f32 %v1757_v27, %v557_v3  ;;  %v1384_v8 = vpop.f32.mrb[30].mxu0 }
 0x2b0   :  { %v569_v33 = vadd.f32 %v1384_v8, %v1757_v27  ;;  %v560_v34 = vpop.f32.mrb[31].mxu0  ;;  %v1870_v51 = vadd.f32 %v566_v9, %v217_v23  ;;  %v1475_v23 = vld [vmem:[%s2042_s11 + $0x8] sm:$0xff]  }
 0x2b1   :  { %v1864_v35 = vadd.f32 %v558_v5, %v215_v21  ;;  %v561_v40 = vadd.f32 %v1757_v27, %v560_v34  ;;  %1401 = vmatprep.mubr.msk.bf16.mxu1 %vm266_vm2, %v608_v6 }
 0x2b2   :  { %v1874_v38 = vadd.f32 %v569_v33, %v218_v20  ;;  %1402 = vmatmul.mubr.msk.bf16.gmra.mrb[24].mxu1 %vm266_vm2, %v609_v32  ;;  %v602_v16 = vmax.f32 %v1870_v51, 0.0  ;;  %v1473_v20 = vld [vmem:[%s2040_s9 + $0x18] sm:$0xff]  }
 0x2b3   :  { %v1879_v45 = vadd.f32 %v561_v40, %v216_v22  ;;  %v600_v21 = vmax.f32 %v1864_v35, 0.0  ;;  %1415 = vmatprep.subr.bf16.mxu0 %v1473_v20  ;;  %v1474_v22 = vld [vmem:[%s2042_s11] sm:$0xff]  }
 0x2b4   :  { %v603_v14 = vmax.f32 %v1874_v38, 0.0  ;;  %1416 = vmatpush3.bf16.msra.mxu0 %v1473_v20  ;;  %1433 = vmatprep.subr.bf16.mxu1 %v1474_v22  ;;  %v1237_v35 = vld [vmem:[%s2045_s12] ss:$0 sm:$0xff] }
 0x2b5   :  { %v601_v27 = vmax.f32 %v1879_v45, 0.0  ;;  %1434 = vmatpush3.bf16.msra.mxu1 %v1474_v22 }
 0x2b6   :  { %v611_v19 = vpack.c.bf16 %v603_v14, %v602_v16  ;;  %1435 = vmatprep.subr.bf16.mxu1 %v1475_v23 }
 0x2b7   :  { %v610_v17 = vpack.c.bf16 %v601_v27, %v600_v21 }
 0x2b9   :  { %1405 = vmatprep.mubr.msk.bf16.mxu1 %vm266_vm2, %v610_v17  ;;  %1436 = vmatpush3.bf16.msra.mxu1 %v1475_v23 }
 0x2ba   :  { %1406 = vmatmul.mubr.msk.bf16.gmra.mrb[28].mxu1 %vm266_vm2, %v611_v19  ;;  %1437 = vmatprep.subr.bf16.mxu1 %v1476_v39 }
 0x2bd   :  { %1438 = vmatpush3.bf16.msra.mxu1 %v1476_v39 }
 0x375   :  { %v1395_v42 = vpop.f32.mrb[16].mxu1 }
 0x376   :  { %v718_v44 = vadd.f32 %v1395_v42, %v1211_v41  ;;  %v709_v60 = vpop.f32.mrb[17].mxu1 }
 0x377   :  { %v710_v61 = vadd.f32 %v1211_v41, %v709_v60  ;;  %v1396_v63 = vpop.f32.mrb[18].mxu1 }
 0x378   :  { %v721_v12 = vadd.f32 %v1396_v63, %v1211_v41  ;;  %v712_v59 = vpop.f32.mrb[19].mxu1  ;;  %v774_v56 = vmax.f32 %v718_v44, 0.0 }
 0x379   :  { %v713_v53 = vadd.f32 %v1211_v41, %v712_v59  ;;  %v772_v58 = vmax.f32 %v710_v61, 0.0 }
 0x37a   :  { %v775_v55 = vmax.f32 %v721_v12, 0.0 }
 0x37b   :  { %v773_v13 = vmax.f32 %v713_v53, 0.0 }
 0x37c   :  { %v789_v15 = vpack.c.bf16 %v775_v55, %v774_v56 }
 0x37d   :  { %v788_v18 = vpack.c.bf16 %v773_v13, %v772_v58  ;;  %v1399_v30 = vpop.f32.mrb[20].mxu1 }
 0x37e   :  { %v734_v31 = vadd.f32 %v1399_v30, %v1211_v41  ;;  %v725_v9 = vpop.f32.mrb[21].mxu1 }
 0x37f   :  { %v726_v3 = vadd.f32 %v1211_v41, %v725_v9  ;;  %v1400_v6 = vpop.f32.mrb[22].mxu1  ;;  %1417 = vmatprep.mubr.msk.bf16.mxu0 %vm266_vm2, %v788_v18 }
 0x380   :  { %v737_v5 = vadd.f32 %v1400_v6, %v1211_v41  ;;  %v728_v8 = vpop.f32.mrb[23].mxu1  ;;  %1418 = vmatmul.mubr.msk.bf16.vlgmr.msra.gmra.mrb[32].mxu0 %vm266_vm2, %v789_v15  ;;  %v778_v33 = vmax.f32 %v734_v31, 0.0 }
 0x381   :  { %v729_v32 = vadd.f32 %v1211_v41, %v728_v8  ;;  %v776_v40 = vmax.f32 %v726_v3, 0.0 }
 0x382   :  { %v779_v34 = vmax.f32 %v737_v5, 0.0 }
 0x383   :  { %v777_v17 = vmax.f32 %v729_v32, 0.0 }
 0x384   :  { %v791_v19 = vpack.c.bf16 %v779_v34, %v778_v33 }
 0x385   :  { %v790_v20 = vpack.c.bf16 %v777_v17, %v776_v40  ;;  %v1403_v22 = vpop.f32.mrb[24].mxu1  ;;  %v1477_v17 = vld [vmem:[%s2042_s11 + $0x18] sm:$0xff]  }
 0x386   :  { %v750_v23 = vadd.f32 %v1403_v22, %v1211_v41  ;;  %v741_v39 = vpop.f32.mrb[25].mxu1  ;;  %1439 = vmatprep.subr.bf16.mxu1 %v1477_v17 }
 0x387   :  { %v742_v42 = vadd.f32 %v1211_v41, %v741_v39  ;;  %v1404_v44 = vpop.f32.mrb[26].mxu1  ;;  %1421 = vmatprep.mubr.msk.bf16.mxu0 %vm266_vm2, %v790_v20  ;;  %1440 = vmatpush3.bf16.msra.mxu1 %v1477_v17 }
 0x388   :  { %v753_v60 = vadd.f32 %v1404_v44, %v1211_v41  ;;  %v744_v61 = vpop.f32.mrb[27].mxu1  ;;  %1422 = vmatmul.mubr.msk.bf16.gmra.mrb[36].mxu0 %vm266_vm2, %v791_v19  ;;  %v782_v12 = vmax.f32 %v750_v23, 0.0 }
 0x389   :  { %v745_v63 = vadd.f32 %v1211_v41, %v744_v61  ;;  %v780_v53 = vmax.f32 %v742_v42, 0.0 }
 0x38a   :  { %v783_v59 = vmax.f32 %v753_v60, 0.0 }
 0x38b   :  { %v781_v56 = vmax.f32 %v745_v63, 0.0 }
 0x38c   :  { %v793_v55 = vpack.c.bf16 %v783_v59, %v782_v12 }
 0x38d   :  { %v792_v58 = vpack.c.bf16 %v781_v56, %v780_v53  ;;  %v1407_v13 = vpop.f32.mrb[28].mxu1 }
 0x38e   :  { %v766_v15 = vadd.f32 %v1407_v13, %v1211_v41  ;;  %v757_v18 = vpop.f32.mrb[29].mxu1 }
 0x38f   :  { %v758_v30 = vadd.f32 %v1211_v41, %v757_v18  ;;  %v1408_v31 = vpop.f32.mrb[30].mxu1  ;;  %1425 = vmatprep.mubr.msk.bf16.mxu0 %vm266_vm2, %v792_v58 }
 0x390   :  { %v769_v9 = vadd.f32 %v1408_v31, %v1211_v41  ;;  %v760_v3 = vpop.f32.mrb[31].mxu1  ;;  %1426 = vmatmul.mubr.msk.bf16.gmra.mrb[40].mxu0 %vm266_vm2, %v793_v55  ;;  %v786_v5 = vmax.f32 %v766_v15, 0.0 }
 0x391   :  { %v761_v6 = vadd.f32 %v1211_v41, %v760_v3  ;;  %v784_v32 = vmax.f32 %v758_v30, 0.0  ;;  %v1924_v41 = vld [vmem:[%s2044_s10] ss:$0 sm:$0xff] }
 0x392   :  { %v787_v8 = vmax.f32 %v769_v9, 0.0 }
 0x393   :  { %v785_v33 = vmax.f32 %v761_v6, 0.0 }
 0x394   :  { %v795_v34 = vpack.c.bf16 %v787_v8, %v786_v5 }
 0x395   :  { %v794_v40 = vpack.c.bf16 %v785_v33, %v784_v32 }
 0x397   :  { %1429 = vmatprep.mubr.msk.bf16.mxu0 %vm266_vm2, %v794_v40 }
 0x398   :  { %1430 = vmatmul.mubr.msk.bf16.gmra.mrb[44].mxu0 %vm266_vm2, %v795_v34 }
 0x453   :  { %v1419_v19 = vpop.f32.mrb[32].mxu0 }
 0x454   :  { %v902_v20 = vadd.f32 %v1419_v19, %v1924_v41  ;;  %v893_v22 = vpop.f32.mrb[33].mxu0 }
 0x455   :  { %v894_v23 = vadd.f32 %v1924_v41, %v893_v22  ;;  %v1420_v39 = vpop.f32.mrb[34].mxu0 }
 0x456   :  { %v958_v42 = vadd.f32 %v902_v20, %v590_v54  ;;  %v905_v44 = vadd.f32 %v1420_v39, %v1924_v41  ;;  %v896_v60 = vpop.f32.mrb[35].mxu0 }
 0x457   :  { %v956_v61 = vadd.f32 %v894_v23, %v588_v36  ;;  %v897_v63 = vadd.f32 %v1924_v41, %v896_v60 }
 0x458   :  { %v959_v12 = vadd.f32 %v905_v44, %v591_v49  ;;  %v974_v53 = vmax.f32 %v958_v42, 0.0 }
 0x459   :  { %v957_v59 = vadd.f32 %v897_v63, %v589_v43  ;;  %v972_v55 = vmax.f32 %v956_v61, 0.0 }
 0x45a   :  { %v975_v56 = vmax.f32 %v959_v12, 0.0 }
 0x45b   :  { %v973_v58 = vmax.f32 %v957_v59, 0.0  ;;  %v1423_v46 = vpop.f32.mrb[36].mxu0 }
 0x45c   :  { %v989_v54 = vpack.c.bf16 %v975_v56, %v974_v53  ;;  %v918_v13 = vadd.f32 %v1423_v46, %v1924_v41  ;;  %v909_v15 = vpop.f32.mrb[37].mxu0 }
 0x45d   :  { %v988_v18 = vpack.c.bf16 %v973_v58, %v972_v55  ;;  %v910_v37 = vadd.f32 %v1924_v41, %v909_v15  ;;  %v1424_v36 = vpop.f32.mrb[38].mxu0 }
 0x45e   :  { %v962_v47 = vadd.f32 %v918_v13, %v594_v52  ;;  %v921_v49 = vadd.f32 %v1424_v36, %v1924_v41  ;;  %v912_v48 = vpop.f32.mrb[39].mxu0 }
 0x45f   :  { %v960_v43 = vadd.f32 %v910_v37, %v592_v57  ;;  %v913_v30 = vadd.f32 %v1924_v41, %v912_v48  ;;  %1441 = vmatprep.mubr.msk.bf16.mxu1 %vm266_vm2, %v988_v18 }
 0x460   :  { %v963_v31 = vadd.f32 %v921_v49, %v595_v50  ;;  %1442 = vmatmul.mubr.msk.bf16.vlgmr.msra.gmra.mrb[32].mxu1 %vm266_vm2, %v989_v54  ;;  %v978_v1 = vmax.f32 %v962_v47, 0.0 }
 0x461   :  { %v961_v9 = vadd.f32 %v913_v30, %v593_v11  ;;  %v976_v3 = vmax.f32 %v960_v43, 0.0 }
 0x462   :  { %v979_v52 = vmax.f32 %v963_v31, 0.0 }
 0x463   :  { %v977_v6 = vmax.f32 %v961_v9, 0.0  ;;  %v1427_v5 = vpop.f32.mrb[40].mxu0 }
 0x464   :  { %v991_v8 = vpack.c.bf16 %v979_v52, %v978_v1  ;;  %v934_v62 = vadd.f32 %v1427_v5, %v1924_v41  ;;  %v925_v57 = vpop.f32.mrb[41].mxu0 }
 0x465   :  { %v990_v32 = vpack.c.bf16 %v977_v6, %v976_v3  ;;  %v926_v33 = vadd.f32 %v1924_v41, %v925_v57  ;;  %v1428_v34 = vpop.f32.mrb[42].mxu0 }
 0x466   :  { %v966_v4 = vadd.f32 %v934_v62, %v598_v2  ;;  %v937_v50 = vadd.f32 %v1428_v34, %v1924_v41  ;;  %v928_v10 = vpop.f32.mrb[43].mxu0 }
 0x467   :  { %v964_v11 = vadd.f32 %v926_v33, %v596_v7  ;;  %v929_v40 = vadd.f32 %v1924_v41, %v928_v10  ;;  %1445 = vmatprep.mubr.msk.bf16.mxu1 %vm266_vm2, %v990_v32 }
 0x468   :  { %v967_v17 = vadd.f32 %v937_v50, %v599_v0  ;;  %1446 = vmatmul.mubr.msk.bf16.gmra.mrb[36].mxu1 %vm266_vm2, %v991_v8  ;;  %v982_v25 = vmax.f32 %v966_v4, 0.0 }
 0x469   :  { %v965_v19 = vadd.f32 %v929_v40, %v597_v29  ;;  %v980_v20 = vmax.f32 %v964_v11, 0.0 }
 0x46a   :  { %v983_v2 = vmax.f32 %v967_v17, 0.0 }
 0x46b   :  { %v981_v22 = vmax.f32 %v965_v19, 0.0  ;;  %v1431_v23 = vpop.f32.mrb[44].mxu0 }
 0x46c   :  { %v993_v39 = vpack.c.bf16 %v983_v2, %v982_v25  ;;  %v950_v24 = vadd.f32 %v1431_v23, %v1924_v41  ;;  %v941_v7 = vpop.f32.mrb[45].mxu0 }
 0x46d   :  { %v992_v42 = vpack.c.bf16 %v981_v22, %v980_v20  ;;  %v942_v44 = vadd.f32 %v1924_v41, %v941_v7  ;;  %v1432_v60 = vpop.f32.mrb[46].mxu0 }
 0x46e   :  { %v970_v26 = vadd.f32 %v950_v24, %v602_v16  ;;  %v953_v0 = vadd.f32 %v1432_v60, %v1924_v41  ;;  %v944_v28 = vpop.f32.mrb[47].mxu0 }
 0x46f   :  { %v968_v29 = vadd.f32 %v942_v44, %v600_v21  ;;  %v945_v61 = vadd.f32 %v1924_v41, %v944_v28  ;;  %1449 = vmatprep.mubr.msk.bf16.mxu1 %vm266_vm2, %v992_v42 }
 0x470   :  { %v971_v63 = vadd.f32 %v953_v0, %v603_v14  ;;  %1450 = vmatmul.mubr.msk.bf16.gmra.mrb[40].mxu1 %vm266_vm2, %v993_v39  ;;  %v986_v51 = vmax.f32 %v970_v26, 0.0 }
 0x471   :  { %v969_v12 = vadd.f32 %v945_v61, %v601_v27  ;;  %v984_v59 = vmax.f32 %v968_v29, 0.0 }
 0x472   :  { %v987_v16 = vmax.f32 %v971_v63, 0.0 }
 0x473   :  { %v985_v53 = vmax.f32 %v969_v12, 0.0 }
 0x474   :  { %v995_v56 = vpack.c.bf16 %v987_v16, %v986_v51 }
 0x475   :  { %v994_v55 = vpack.c.bf16 %v985_v53, %v984_v59 }
 0x477   :  { %1453 = vmatprep.mubr.msk.bf16.mxu1 %vm266_vm2, %v994_v55 }
 0x478   :  { %1454 = vmatmul.mubr.msk.bf16.gmra.mrb[44].mxu1 %vm266_vm2, %v995_v56 }
 0x533   :  { %v1443_v38 = vpop.f32.mrb[32].mxu1 }
 0x534   :  { %v1102_v14 = vadd.f32 %v1443_v38, %v1237_v35  ;;  %v1093_v21 = vpop.f32.mrb[33].mxu1 }
 0x535   :  { %v1094_v41 = vadd.f32 %v1237_v35, %v1093_v21  ;;  %v1444_v45 = vpop.f32.mrb[34].mxu1 }
 0x536   :  { %1158 = vst [vmem:[%s2046_s13 + $0x10] sm:$0xff] %v1102_v14  ;;  %v1105_v27 = vadd.f32 %v1444_v45, %v1237_v35  ;;  %v1096_v58 = vpop.f32.mrb[35].mxu1 }
 0x537   :  { %1156 = vst [vmem:[%s2046_s13] sm:$0xff] %v1094_v41  ;;  %v1097_v46 = vadd.f32 %v1237_v35, %v1096_v58 }
 0x538   :  { %1159 = vst [vmem:[%s2046_s13 + $0x18] sm:$0xff] %v1105_v27 }
 0x539   :  { %1157 = vst [vmem:[%s2046_s13 + $0x8] sm:$0xff] %v1097_v46 }
 0x53b   :  { %v1447_v54 = vpop.f32.mrb[36].mxu1 }
 0x53c   :  { %v1118_v13 = vadd.f32 %v1447_v54, %v1237_v35  ;;  %v1109_v15 = vpop.f32.mrb[37].mxu1 }
 0x53d   :  { %v1110_v18 = vadd.f32 %v1237_v35, %v1109_v15  ;;  %v1448_v37 = vpop.f32.mrb[38].mxu1 }
 0x53e   :  { %1162 = vst [vmem:[%s2046_s13 + $0x30] sm:$0xff] %v1118_v13  ;;  %v1121_v36 = vadd.f32 %v1448_v37, %v1237_v35  ;;  %v1112_v47 = vpop.f32.mrb[39].mxu1 }
 0x53f   :  { %1160 = vst [vmem:[%s2046_s13 + $0x20] sm:$0xff] %v1110_v18  ;;  %v1113_v49 = vadd.f32 %v1237_v35, %v1112_v47 }
 0x540   :  { %1163 = vst [vmem:[%s2046_s13 + $0x38] sm:$0xff] %v1121_v36 }
 0x541   :  { %1161 = vst [vmem:[%s2046_s13 + $0x28] sm:$0xff] %v1113_v49 }
 0x543   :  { %v1451_v48 = vpop.f32.mrb[40].mxu1 }
 0x544   :  { %v1134_v43 = vadd.f32 %v1451_v48, %v1237_v35  ;;  %v1125_v30 = vpop.f32.mrb[41].mxu1 }
 0x545   :  { %v1126_v31 = vadd.f32 %v1237_v35, %v1125_v30  ;;  %v1452_v9 = vpop.f32.mrb[42].mxu1 }
 0x546   :  { %1166 = vst [vmem:[%s2046_s13 + $0x50] sm:$0xff] %v1134_v43  ;;  %v1137_v1 = vadd.f32 %v1452_v9, %v1237_v35  ;;  %v1128_v52 = vpop.f32.mrb[43].mxu1 }
 0x547   :  { %1164 = vst [vmem:[%s2046_s13 + $0x40] sm:$0xff] %v1126_v31  ;;  %v1129_v3 = vadd.f32 %v1237_v35, %v1128_v52 }
 0x548   :  { %1167 = vst [vmem:[%s2046_s13 + $0x58] sm:$0xff] %v1137_v1 }
 0x549   :  { %1165 = vst [vmem:[%s2046_s13 + $0x48] sm:$0xff] %v1129_v3 }
 0x54b   :  { %v1455_v6 = vpop.f32.mrb[44].mxu1 }
 0x54c   :  { %v1150_v5 = vadd.f32 %v1455_v6, %v1237_v35  ;;  %v1141_v8 = vpop.f32.mrb[45].mxu1 }
 0x54d   :  { %v1142_v62 = vadd.f32 %v1237_v35, %v1141_v8  ;;  %v1456_v57 = vpop.f32.mrb[46].mxu1 }
 0x54e   :  { %1170 = vst [vmem:[%s2046_s13 + $0x70] sm:$0xff] %v1150_v5  ;;  %v1153_v32 = vadd.f32 %v1456_v57, %v1237_v35  ;;  %v1144_v33 = vpop.f32.mrb[47].mxu1 }
 0x54f   :  { %1168 = vst [vmem:[%s2046_s13 + $0x60] sm:$0xff] %v1142_v62  ;;  %v1145_v34 = vadd.f32 %v1237_v35, %v1144_v33 }
 0x550   :  { %1171 = vst [vmem:[%s2046_s13 + $0x78] sm:$0xff] %v1153_v32 }
 0x551   :  { %1169 = vst [vmem:[%s2046_s13 + $0x68] sm:$0xff] %v1145_v34 }

</bundles_post_ra>
